<compile_context>
chip_gen: v6e
topology: v6e:2x2x1
jax: 0.10.0
libtpu: 0.0.40
codegen_flags: <defaults>
</compile_context>

<pallas_src>
import jax
import jax.numpy as jnp
from jax.experimental import pallas as pl
from jax.experimental.pallas import tpu as pltpu

BN_EPS = 1e-5
NEG_SLOPE = 0.01  # PyTorch LeakyReLU default


# ----------------------------------------------------------------------------
# Fused kernel: 3 x (Linear + BN(train) + LeakyReLU)  +  fused mu/logvar head
# ----------------------------------------------------------------------------
def _nexus_encoder_kernel(
    x_ref,      # (B, D_in)   f32
    w1_ref,     # (D_in, 512) bf16
    w2_ref,     # (512, 512)  bf16
    w3_ref,     # (512, 512)  bf16
    wh_ref,     # (512, 2L)   bf16   [fc_mu | fc_logvar]
    bn_ref,     # (6, 512)    f32    rows: g1, be1, g2, be2, g3, be3
    bh_ref,     # (1, 2L)     f32    [b_mu | b_logvar]
    out_ref,    # (B, 2L)     f32    [mu | logvar]
):
    bn = bn_ref[...]  # (6, 512) f32, loaded once

    def layer(h_bf16, w_ref, gamma, beta):
        # Linear (bias-free: pre-BN bias cancels exactly in train-mode BN).
        z = jnp.dot(h_bf16, w_ref[...], preferred_element_type=jnp.float32)
        # Train-mode BatchNorm1d: batch stats, biased variance, two-pass var.
        mean = jnp.mean(z, axis=0, keepdims=True)
        zc = z - mean
        var = jnp.mean(zc * zc, axis=0, keepdims=True)
        y = zc * (gamma * jax.lax.rsqrt(var + BN_EPS)) + beta  # rsqrt -> EUP
        # LeakyReLU (negative_slope = 0.01)
        y = jnp.where(y > 0.0, y, NEG_SLOPE * y)
        return y.astype(jnp.bfloat16)  # feed the next MXU matmul in bf16

    h = x_ref[...].astype(jnp.bfloat16)                    # (B, D_in)
    h = layer(h, w1_ref, bn[0:1], bn[1:2])                 # (B, 512)
    h = layer(h, w2_ref, bn[2:3], bn[3:4])                 # (B, 512)
    h = layer(h, w3_ref, bn[4:5], bn[5:6])                 # (B, 512)

    # Fused head: one lane-dense 512 x (2L) matmul, single unmasked store.
    out_ref[...] = (
        jnp.dot(h, wh_ref[...], preferred_element_type=jnp.float32)
        + bh_ref[...]
    )


# ----------------------------------------------------------------------------
# Wrapper
# ----------------------------------------------------------------------------
def mhd_nexus_encoder_forward(x, params):
    B = x.shape[0]
    L2 = params["head_w"].shape[1]   # 2 * latent_dim (static)
    L = L2 // 2

    args = (
        x,
        params["w1"], params["w2"], params["w3"],
        params["head_w"],
        params["bn"],
        params["head_b"],
    )

    vmem = pl.BlockSpec(memory_space=pltpu.MemorySpace.VMEM)
    out = pl.pallas_call(
        _nexus_encoder_kernel,
        out_shape=jax.ShapeDtypeStruct((B, L2), jnp.float32),
        in_specs=[vmem] * len(args),
        out_specs=pl.BlockSpec(memory_space=pltpu.MemorySpace.VMEM),
    )(*args)

    # Slice the fused lane-dense output into (mu, logvar) in the wrapper.
    return out[:, :L], out[:, L:]


# ----------------------------------------------------------------------------
# Deterministic synthetic parameter init (shapes per the module's __init__)
# ----------------------------------------------------------------------------
def init_params(key, input_dim, latent_dim):
    ks = jax.random.split(key, 16)

    def lin_w(k, fan_in, fan_out):
        # PyTorch Linear weight is (out, in); store transposed (in, out),
        # pre-cast to bf16 (halves weight DMA bytes, doubles MXU throughput).
        w = jax.random.normal(k, (fan_in, fan_out), jnp.float32) / jnp.sqrt(
            float(fan_in)
        )
        return w.astype(jnp.bfloat16)

    def vec(k, n, scale=0.1, base=0.0):
        return base + scale * jax.random.normal(k, (n,), jnp.float32)

    p = {}
    # Encoder linear weights (pre-BN biases dropped: exact cancellation).
    p["w1"] = lin_w(ks[0], input_dim, 512)
    p["w2"] = lin_w(ks[1], 512, 512)
    p["w3"] = lin_w(ks[2], 512, 512)

    # BatchNorm affine params, packed into one (6, 512) operand:
    # rows = [g1, be1, g2, be2, g3, be3].
    p["bn"] = jnp.stack(
        [
            vec(ks[3], 512, base=1.0), vec(ks[4], 512),
            vec(ks[5], 512, base=1.0), vec(ks[6], 512),
            vec(ks[7], 512, base=1.0), vec(ks[8], 512),
        ],
        axis=0,
    )

    # Fused head: [fc_mu | fc_logvar] concatenated along the output dim.
    w_mu = lin_w(ks[9], 512, latent_dim)
    w_lv = lin_w(ks[10], 512, latent_dim)
    p["head_w"] = jnp.concatenate([w_mu, w_lv], axis=1)          # (512, 2L) bf16
    b_mu = vec(ks[11], latent_dim)
    b_lv = vec(ks[12], latent_dim)
    p["head_b"] = jnp.concatenate([b_mu, b_lv])[None, :]         # (1, 2L) f32
    return p


if __name__ == "__main__":
    key = jax.random.PRNGKey(0)
    k_params, k_x = jax.random.split(key)

    input_dim = 128
    latent_dim = 64
    batch = 8

    params = init_params(k_params, input_dim, latent_dim)
    x = jax.random.normal(k_x, (batch, input_dim), jnp.float32)

    fwd = jax.jit(mhd_nexus_encoder_forward)
    mu, logvar = fwd(x, params)
    jax.block_until_ready((mu, logvar))

    assert mu.shape == (batch, latent_dim), mu.shape
    assert logvar.shape == (batch, latent_dim), logvar.shape
    assert bool(jnp.all(jnp.isfinite(mu)))
    assert bool(jnp.all(jnp.isfinite(logvar)))
    print("KERNEL_OK")
</pallas_src>

<mosaic_0001>
module attributes {stable_mosaic.version = 11 : i64} {
  func.func @_nexus_encoder_kernel(%arg0: memref<8x128xf32, #tpu.memory_space<vmem>>, %arg1: memref<128x512xbf16, #tpu.memory_space<vmem>>, %arg2: memref<512x512xbf16, #tpu.memory_space<vmem>>, %arg3: memref<512x512xbf16, #tpu.memory_space<vmem>>, %arg4: memref<512x128xbf16, #tpu.memory_space<vmem>>, %arg5: memref<6x512xf32, #tpu.memory_space<vmem>>, %arg6: memref<1x128xf32, #tpu.memory_space<vmem>>, %arg7: memref<8x128xf32, #tpu.memory_space<vmem>>) attributes {dimension_semantics = [], scalar_prefetch = 0 : i64, scratch_operands = 0 : i64, tpu.core_type = #tpu.core_type<tc>} {
    %c0 = arith.constant 0 : index
    %c0_0 = arith.constant 0 : index
    %0 = vector.load %arg5[%c0, %c0_0] : memref<6x512xf32, #tpu.memory_space<vmem>>, vector<6x512xf32>
    %c0_1 = arith.constant 0 : index
    %c0_2 = arith.constant 0 : index
    %1 = vector.load %arg0[%c0_1, %c0_2] : memref<8x128xf32, #tpu.memory_space<vmem>>, vector<8x128xf32>
    %2 = arith.truncf %1 : vector<8x128xf32> to vector<8x128xbf16>
    %3 = vector.extract_strided_slice %0 {offsets = [0, 0], sizes = [1, 512], strides = [1, 1]} : vector<6x512xf32> to vector<1x512xf32>
    %4 = vector.extract_strided_slice %0 {offsets = [1, 0], sizes = [1, 512], strides = [1, 1]} : vector<6x512xf32> to vector<1x512xf32>
    %c0_3 = arith.constant 0 : index
    %c0_4 = arith.constant 0 : index
    %5 = vector.load %arg1[%c0_3, %c0_4] : memref<128x512xbf16, #tpu.memory_space<vmem>>, vector<128x512xbf16>
    %cst = arith.constant dense<0.000000e+00> : vector<8x512xf32>
    %6 = tpu.matmul %2, %5, %cst {dimension_numbers = #tpu.dot_dimension_numbers<[1], [0], [0], [1], [0, 0, 1, 1], [], []>} : vector<8x128xbf16>, vector<128x512xbf16>, vector<8x512xf32> -> vector<8x512xf32>
    %cst_5 = arith.constant dense<0.000000e+00> : vector<512xf32>
    %7 = vector.multi_reduction <add>, %6, %cst_5 [0] : vector<8x512xf32> to vector<512xf32>
    %8 = vector.shape_cast %7 : vector<512xf32> to vector<1x512xf32>
    %cst_6 = arith.constant 8.000000e+00 : f32
    %9 = vector.broadcast %cst_6 : f32 to vector<1x512xf32>
    %10 = arith.divf %8, %9 : vector<1x512xf32>
    %11 = vector.broadcast %10 : vector<1x512xf32> to vector<8x512xf32>
    %12 = arith.subf %6, %11 : vector<8x512xf32>
    %13 = arith.mulf %12, %12 : vector<8x512xf32>
    %cst_7 = arith.constant dense<0.000000e+00> : vector<512xf32>
    %14 = vector.multi_reduction <add>, %13, %cst_7 [0] : vector<8x512xf32> to vector<512xf32>
    %15 = vector.shape_cast %14 : vector<512xf32> to vector<1x512xf32>
    %cst_8 = arith.constant 8.000000e+00 : f32
    %16 = vector.broadcast %cst_8 : f32 to vector<1x512xf32>
    %17 = arith.divf %15, %16 : vector<1x512xf32>
    %cst_9 = arith.constant 9.99999974E-6 : f32
    %18 = vector.broadcast %cst_9 : f32 to vector<1x512xf32>
    %19 = arith.addf %17, %18 : vector<1x512xf32>
    %20 = math.rsqrt %19 : vector<1x512xf32>
    %21 = arith.mulf %3, %20 : vector<1x512xf32>
    %22 = vector.broadcast %21 : vector<1x512xf32> to vector<8x512xf32>
    %23 = arith.mulf %12, %22 : vector<8x512xf32>
    %24 = vector.broadcast %4 : vector<1x512xf32> to vector<8x512xf32>
    %25 = arith.addf %23, %24 : vector<8x512xf32>
    %cst_10 = arith.constant 0.000000e+00 : f32
    %26 = vector.broadcast %cst_10 : f32 to vector<8x512xf32>
    %27 = arith.cmpf ogt, %25, %26 : vector<8x512xf32>
    %cst_11 = arith.constant 0.00999999977 : f32
    %28 = vector.broadcast %cst_11 : f32 to vector<8x512xf32>
    %29 = arith.mulf %28, %25 : vector<8x512xf32>
    %30 = arith.select %27, %25, %29 : vector<8x512xi1>, vector<8x512xf32>
    %31 = arith.truncf %30 : vector<8x512xf32> to vector<8x512xbf16>
    %32 = vector.extract_strided_slice %0 {offsets = [2, 0], sizes = [1, 512], strides = [1, 1]} : vector<6x512xf32> to vector<1x512xf32>
    %33 = vector.extract_strided_slice %0 {offsets = [3, 0], sizes = [1, 512], strides = [1, 1]} : vector<6x512xf32> to vector<1x512xf32>
    %c0_12 = arith.constant 0 : index
    %c0_13 = arith.constant 0 : index
    %34 = vector.load %arg2[%c0_12, %c0_13] : memref<512x512xbf16, #tpu.memory_space<vmem>>, vector<512x512xbf16>
    %cst_14 = arith.constant dense<0.000000e+00> : vector<8x512xf32>
    %35 = tpu.matmul %31, %34, %cst_14 {dimension_numbers = #tpu.dot_dimension_numbers<[1], [0], [0], [1], [0, 0, 1, 1], [], []>} : vector<8x512xbf16>, vector<512x512xbf16>, vector<8x512xf32> -> vector<8x512xf32>
    %cst_15 = arith.constant dense<0.000000e+00> : vector<512xf32>
    %36 = vector.multi_reduction <add>, %35, %cst_15 [0] : vector<8x512xf32> to vector<512xf32>
    %37 = vector.shape_cast %36 : vector<512xf32> to vector<1x512xf32>
    %cst_16 = arith.constant 8.000000e+00 : f32
    %38 = vector.broadcast %cst_16 : f32 to vector<1x512xf32>
    %39 = arith.divf %37, %38 : vector<1x512xf32>
    %40 = vector.broadcast %39 : vector<1x512xf32> to vector<8x512xf32>
    %41 = arith.subf %35, %40 : vector<8x512xf32>
    %42 = arith.mulf %41, %41 : vector<8x512xf32>
    %cst_17 = arith.constant dense<0.000000e+00> : vector<512xf32>
    %43 = vector.multi_reduction <add>, %42, %cst_17 [0] : vector<8x512xf32> to vector<512xf32>
    %44 = vector.shape_cast %43 : vector<512xf32> to vector<1x512xf32>
    %cst_18 = arith.constant 8.000000e+00 : f32
    %45 = vector.broadcast %cst_18 : f32 to vector<1x512xf32>
    %46 = arith.divf %44, %45 : vector<1x512xf32>
    %cst_19 = arith.constant 9.99999974E-6 : f32
    %47 = vector.broadcast %cst_19 : f32 to vector<1x512xf32>
    %48 = arith.addf %46, %47 : vector<1x512xf32>
    %49 = math.rsqrt %48 : vector<1x512xf32>
    %50 = arith.mulf %32, %49 : vector<1x512xf32>
    %51 = vector.broadcast %50 : vector<1x512xf32> to vector<8x512xf32>
    %52 = arith.mulf %41, %51 : vector<8x512xf32>
    %53 = vector.broadcast %33 : vector<1x512xf32> to vector<8x512xf32>
    %54 = arith.addf %52, %53 : vector<8x512xf32>
    %cst_20 = arith.constant 0.000000e+00 : f32
    %55 = vector.broadcast %cst_20 : f32 to vector<8x512xf32>
    %56 = arith.cmpf ogt, %54, %55 : vector<8x512xf32>
    %cst_21 = arith.constant 0.00999999977 : f32
    %57 = vector.broadcast %cst_21 : f32 to vector<8x512xf32>
    %58 = arith.mulf %57, %54 : vector<8x512xf32>
    %59 = arith.select %56, %54, %58 : vector<8x512xi1>, vector<8x512xf32>
    %60 = arith.truncf %59 : vector<8x512xf32> to vector<8x512xbf16>
    %61 = vector.extract_strided_slice %0 {offsets = [4, 0], sizes = [1, 512], strides = [1, 1]} : vector<6x512xf32> to vector<1x512xf32>
    %62 = vector.extract_strided_slice %0 {offsets = [5, 0], sizes = [1, 512], strides = [1, 1]} : vector<6x512xf32> to vector<1x512xf32>
    %c0_22 = arith.constant 0 : index
    %c0_23 = arith.constant 0 : index
    %63 = vector.load %arg3[%c0_22, %c0_23] : memref<512x512xbf16, #tpu.memory_space<vmem>>, vector<512x512xbf16>
    %cst_24 = arith.constant dense<0.000000e+00> : vector<8x512xf32>
    %64 = tpu.matmul %60, %63, %cst_24 {dimension_numbers = #tpu.dot_dimension_numbers<[1], [0], [0], [1], [0, 0, 1, 1], [], []>} : vector<8x512xbf16>, vector<512x512xbf16>, vector<8x512xf32> -> vector<8x512xf32>
    %cst_25 = arith.constant dense<0.000000e+00> : vector<512xf32>
    %65 = vector.multi_reduction <add>, %64, %cst_25 [0] : vector<8x512xf32> to vector<512xf32>
    %66 = vector.shape_cast %65 : vector<512xf32> to vector<1x512xf32>
    %cst_26 = arith.constant 8.000000e+00 : f32
    %67 = vector.broadcast %cst_26 : f32 to vector<1x512xf32>
    %68 = arith.divf %66, %67 : vector<1x512xf32>
    %69 = vector.broadcast %68 : vector<1x512xf32> to vector<8x512xf32>
    %70 = arith.subf %64, %69 : vector<8x512xf32>
    %71 = arith.mulf %70, %70 : vector<8x512xf32>
    %cst_27 = arith.constant dense<0.000000e+00> : vector<512xf32>
    %72 = vector.multi_reduction <add>, %71, %cst_27 [0] : vector<8x512xf32> to vector<512xf32>
    %73 = vector.shape_cast %72 : vector<512xf32> to vector<1x512xf32>
    %cst_28 = arith.constant 8.000000e+00 : f32
    %74 = vector.broadcast %cst_28 : f32 to vector<1x512xf32>
    %75 = arith.divf %73, %74 : vector<1x512xf32>
    %cst_29 = arith.constant 9.99999974E-6 : f32
    %76 = vector.broadcast %cst_29 : f32 to vector<1x512xf32>
    %77 = arith.addf %75, %76 : vector<1x512xf32>
    %78 = math.rsqrt %77 : vector<1x512xf32>
    %79 = arith.mulf %61, %78 : vector<1x512xf32>
    %80 = vector.broadcast %79 : vector<1x512xf32> to vector<8x512xf32>
    %81 = arith.mulf %70, %80 : vector<8x512xf32>
    %82 = vector.broadcast %62 : vector<1x512xf32> to vector<8x512xf32>
    %83 = arith.addf %81, %82 : vector<8x512xf32>
    %cst_30 = arith.constant 0.000000e+00 : f32
    %84 = vector.broadcast %cst_30 : f32 to vector<8x512xf32>
    %85 = arith.cmpf ogt, %83, %84 : vector<8x512xf32>
    %cst_31 = arith.constant 0.00999999977 : f32
    %86 = vector.broadcast %cst_31 : f32 to vector<8x512xf32>
    %87 = arith.mulf %86, %83 : vector<8x512xf32>
    %88 = arith.select %85, %83, %87 : vector<8x512xi1>, vector<8x512xf32>
    %89 = arith.truncf %88 : vector<8x512xf32> to vector<8x512xbf16>
    %c0_32 = arith.constant 0 : index
    %c0_33 = arith.constant 0 : index
    %90 = vector.load %arg4[%c0_32, %c0_33] : memref<512x128xbf16, #tpu.memory_space<vmem>>, vector<512x128xbf16>
    %cst_34 = arith.constant dense<0.000000e+00> : vector<8x128xf32>
    %91 = tpu.matmul %89, %90, %cst_34 {dimension_numbers = #tpu.dot_dimension_numbers<[1], [0], [0], [1], [0, 0, 1, 1], [], []>} : vector<8x512xbf16>, vector<512x128xbf16>, vector<8x128xf32> -> vector<8x128xf32>
    %c0_35 = arith.constant 0 : index
    %c0_36 = arith.constant 0 : index
    %92 = vector.load %arg6[%c0_35, %c0_36] : memref<1x128xf32, #tpu.memory_space<vmem>>, vector<1x128xf32>
    %93 = vector.broadcast %92 : vector<1x128xf32> to vector<8x128xf32>
    %94 = arith.addf %91, %93 : vector<8x128xf32>
    %c0_37 = arith.constant 0 : index
    %c0_38 = arith.constant 0 : index
    %95 = vector.load %arg7[%c0_37, %c0_38] : memref<8x128xf32, #tpu.memory_space<vmem>>, vector<8x128xf32>
    tpu.vector_store %arg7[%c0_37, %c0_38], %94 {strides = array<i32>} : memref<8x128xf32, #tpu.memory_space<vmem>>, vector<8x128xf32>,
    return
  }
}

</mosaic_0001>

<bundles_post_ra>
// kernel: mhd_nexus_encoder_forward.1
= control target key start
LH: loop header
LB: loop body
LE: loop exit
PB: predicated region body
PF: predicated region fallthrough
CT: control target
= control target key end

     0   :  { %12 = vsyncpa [#allocation3], 0  ;;  %s4186_s0 = inlined_call_operand.hbm [shape: f32[8,128], index: 0, kind: input, shape index: {}]   ;;  %s4187_s1 = inlined_call_operand.hbm [shape: bf16[128,512], index: 1, kind: input, shape index: {}]   ;;  %s4188_s2 = inlined_call_operand.hbm [shape: bf16[512,512], index: 2, kind: input, shape index: {}]   ;;  %s4189_s3 = inlined_call_operand.hbm [shape: bf16[512,512], index: 3, kind: input, shape index: {}]   ;;  %s4190_s4 = inlined_call_operand.hbm [shape: bf16[512,128], index: 4, kind: input, shape index: {}]   ;;  %s4191_s5 = inlined_call_operand.hbm [shape: f32[6,512], index: 5, kind: input, shape index: {}]   ;;  %s4192_s6 = inlined_call_operand.vmem [shape: f32[1,128], index: 6, kind: input, shape index: {}]   ;;  %s4193_s7 = inlined_call_operand.vmem [shape: f32[8,128], index: 7, kind: output, shape index: {}]  }
   0x1   :  { %13 = vsyncpa [#allocation5], 0 }
   0x2   :  { %14 = vsyncpa [#allocation8], 0 }
   0x3   :  { %15 = vsyncpa [#allocation11], 0  ;;  %s3994_s24 = smov [#allocation4]  }
   0x4   :  { %s31_s25 = sshll.u32 %s3994_s24, 4  ;;  %s32_s25 = int_to_ptr.vmem [resolvable:$true] %s31_s25 }
   0x5   :  { %s3874_s26 = scalar_lea.vmem %s32_s25, 4096  ;;  %p3879_p1 = scmp.lt.s32.totalorder %s32_s25, %s32_s25 }
   0x6   :  { %p3875_p0 = scmp.ne.s32.totalorder %s32_s25, %s3874_s26  ;;  %p3880_p2 = scmp.lt.s32.totalorder %s3874_s26, %s3874_s26 }
   0x8   :  { %p3881_p3 = por %p3880_p2, %p3879_p1 }
   0xa   :  { %p3882_p4 = pnand %p3881_p3, %p3875_p0 }
   0xc   :  { %3885 = shalt.err (!%p3882_p4)
}
   0xd   :  { %s3995_s27 = smov 256   ;;  %s3996_s28 = smov 16  }
   0xe   :  { %37 = dma.hbm_to_vmem [thread:$0]  %s4187_s1, 4096, %s32_s25, [#allocation5], %s3995_s27, %s3995_s27, %s3996_s28  }
   0xf   :  { %s3997_s8 = smov [#allocation7]   ;;  %s3998_s10 = smov [#allocation2]  }
  0x10   :  { %s55_s9 = sshll.u32 %s3997_s8, 4  ;;  %s22_s11 = sshll.u32 %s3998_s10, 4  ;;  %s56_s9 = int_to_ptr.vmem [resolvable:$true] %s55_s9  ;;  %s23_s11 = int_to_ptr.vmem [resolvable:$true] %s22_s11 }
  0x11   :  { %s3894_s12 = scalar_lea.vmem %s56_s9, 16384  ;;  %p3899_p6 = scmp.lt.s32.totalorder %s56_s9, %s56_s9 }
  0x12   :  { %p3895_p5 = scmp.ne.s32.totalorder %s56_s9, %s3894_s12  ;;  %p3900_p7 = scmp.lt.s32.totalorder %s3894_s12, %s3894_s12 }
  0x14   :  { %p3901_p8 = por %p3900_p7, %p3899_p6 }
  0x16   :  { %p3902_p9 = pnand %p3901_p8, %p3895_p5 }
  0x18   :  { %3905 = shalt.err (!%p3902_p9)
}
  0x19   :  { %61 = dma.hbm_to_vmem [thread:$0]  %s4189_s3, 16384, %s56_s9, [#allocation8], %s3995_s27, %s3995_s27, %s3996_s28  }
  0x1a   :  { %s3914_s1 = scalar_lea.vmem %s23_s11, 128  ;;  %p3919_p11 = scmp.lt.s32.totalorder %s23_s11, %s23_s11 }
  0x1b   :  { %p3915_p10 = scmp.ne.s32.totalorder %s23_s11, %s3914_s1  ;;  %p3920_p12 = scmp.lt.s32.totalorder %s3914_s1, %s3914_s1 }
  0x1d   :  { %p3921_p13 = por %p3920_p12, %p3919_p11 }
  0x1f   :  { %p3922_p0 = pnand %p3921_p13, %p3915_p10 }
  0x21   :  { %3925 = shalt.err (!%p3922_p0)
}
  0x22   :  { %25 = dma.hbm_to_vmem [thread:$0]  %s4186_s0, 128, %s23_s11, [#allocation3]  }
  0x23   :  { %s3999_s17 = smov [#allocation6]   ;;  %s4000_s19 = smov [#allocation9]  }
  0x24   :  { %s43_s18 = sshll.u32 %s3999_s17, 4  ;;  %s67_s20 = sshll.u32 %s4000_s19, 4  ;;  %s44_s18 = int_to_ptr.vmem [resolvable:$true] %s43_s18  ;;  %s68_s20 = int_to_ptr.vmem [resolvable:$true] %s67_s20 }
  0x25   :  { %s3934_s21 = scalar_lea.vmem %s44_s18, 16384  ;;  %p3939_p2 = scmp.lt.s32.totalorder %s44_s18, %s44_s18 }
  0x26   :  { %p3935_p1 = scmp.ne.s32.totalorder %s44_s18, %s3934_s21  ;;  %p3940_p3 = scmp.lt.s32.totalorder %s3934_s21, %s3934_s21 }
  0x28   :  { %p3941_p4 = por %p3940_p3, %p3939_p2 }
  0x2a   :  { %p3942_p5 = pnand %p3941_p4, %p3935_p1 }
  0x2c   :  { %3945 = shalt.err (!%p3942_p5)
}
  0x2d   :  { %49 = dma.hbm_to_vmem [thread:$0]  %s4188_s2, 16384, %s44_s18, [#allocation5], %s3995_s27, %s3995_s27, %s3996_s28  }
  0x2e   :  { %s3954_s0 = scalar_lea.vmem %s68_s20, 4096  ;;  %p3959_p7 = scmp.lt.s32.totalorder %s68_s20, %s68_s20 }
  0x2f   :  { %p3955_p6 = scmp.ne.s32.totalorder %s68_s20, %s3954_s0  ;;  %p3960_p8 = scmp.lt.s32.totalorder %s3954_s0, %s3954_s0 }
  0x31   :  { %p3961_p9 = por %p3960_p8, %p3959_p7 }
  0x33   :  { %p3962_p10 = pnand %p3961_p9, %p3955_p6 }
  0x35   :  { %3965 = shalt.err (!%p3962_p10)
}
  0x36   :  { %s4001_s23 = smov 64   ;;  %s4002_s24 = smov 4  }
  0x37   :  { %73 = dma.hbm_to_vmem [thread:$0]  %s4190_s4, 4096, %s68_s20, [#allocation8], %s4001_s23, %s4001_s23, %s4002_s24  }
  0x38   :  { %s4003_s29 = smov [#allocation10]  }
  0x39   :  { %s80_s30 = sshll.u32 %s4003_s29, 4  ;;  %s81_s30 = int_to_ptr.vmem [resolvable:$true] %s80_s30 }
  0x3a   :  { %s3974_s8 = scalar_lea.vmem %s81_s30, 512  ;;  %p3979_p12 = scmp.lt.s32.totalorder %s81_s30, %s81_s30 }
  0x3b   :  { %p3975_p11 = scmp.ne.s32.totalorder %s81_s30, %s3974_s8  ;;  %p3980_p13 = scmp.lt.s32.totalorder %s3974_s8, %s3974_s8 }
  0x3d   :  { %p3981_p0 = por %p3980_p13, %p3979_p12 }
  0x3f   :  { %p3982_p1 = pnand %p3981_p0, %p3975_p11 }
  0x41   :  { %3985 = shalt.err (!%p3982_p1)
}
  0x42   :  { %83 = dma.hbm_to_vmem [thread:$0]  %s4191_s5, 512, %s81_s30, [#allocation11]  }
  0x43   :  { %3986 = dma.done.wait [#allocation3], 128  }
  0x44   :  { %3987 = vsyncadd [#allocation3], 4294967168 }
  0x45   :  { %3988 = dma.done.wait [#allocation5], 20480  }
  0x46   :  { %3989 = vsyncadd [#allocation5], 4294946816 }
  0x47   :  { %3990 = dma.done.wait [#allocation8], 20480  }
  0x48   :  { %3991 = vsyncadd [#allocation8], 4294946816 }
  0x49   :  { %3992 = dma.done.wait [#allocation11], 512  }
  0x4a   :  { %3993 = vsyncadd [#allocation11], 4294966784  ;;  %v4004_v0 = vmov 0   ;;  %v3374_v1 = vld [vmem:[#allocation4 + $0xe4] ss:$16 sps:$4 sm:$0xff]   ;;  %v109_v33 = vld [vmem:[#allocation2] sm:$0xff] }
  0x4b   :  { %335 = vmatprep.mubr.bf16.mxu0 %v4004_v0  ;;  %376 = vmatprep.mubr.bf16.mxu1 %v4004_v0  ;;  %v3376_v2 = vld [vmem:[#allocation4 + $0xec] ss:$16 sps:$4 sm:$0xff]   ;;  %v3378_v3 = vld [vmem:[#allocation4 + $0xe0] ss:$16 sps:$4 sm:$0xff]   ;;  %v3379_v4 = vld [vmem:[#allocation4 + $0xe8] ss:$16 sps:$4 sm:$0xff]   ;;  %v110_v34 = vpack.c.bf16 %v109_v33, %v109_v33 }
  0x4c   :  { %303 = vmatprep.subr.bf16.mxu0 %v3374_v1  ;;  %344 = vmatprep.subr.bf16.mxu1 %v3376_v2  ;;  %v3380_v5 = vld [vmem:[#allocation4 + $0xc4] ss:$16 sps:$4 sm:$0xff]   ;;  %v3382_v6 = vld [vmem:[#allocation4 + $0xcc] ss:$16 sps:$4 sm:$0xff]   ;;  %v3384_v7 = vld [vmem:[#allocation4 + $0xc0] ss:$16 sps:$4 sm:$0xff]  }
  0x4d   :  { %304 = vmatpush1.bf16.msra.mxu0 %v3378_v3  ;;  %345 = vmatpush1.bf16.msra.mxu1 %v3379_v4  ;;  %v3385_v8 = vld [vmem:[#allocation4 + $0xc8] ss:$16 sps:$4 sm:$0xff]   ;;  %v3386_v9 = vld [vmem:[#allocation4 + $0xa4] ss:$16 sps:$4 sm:$0xff]   ;;  %v3388_v10 = vld [vmem:[#allocation4 + $0xac] ss:$16 sps:$4 sm:$0xff]  }
  0x4e   :  { %305 = vmatprep.subr.bf16.mxu0 %v3380_v5  ;;  %346 = vmatprep.subr.bf16.mxu1 %v3382_v6  ;;  %v3390_v11 = vld [vmem:[#allocation4 + $0xa0] ss:$16 sps:$4 sm:$0xff]   ;;  %v3391_v12 = vld [vmem:[#allocation4 + $0xa8] ss:$16 sps:$4 sm:$0xff]   ;;  %v3392_v13 = vld [vmem:[#allocation4 + $0x84] ss:$16 sps:$4 sm:$0xff]  }
  0x4f   :  { %v3394_v14 = vld [vmem:[#allocation4 + $0x8c] ss:$16 sps:$4 sm:$0xff]   ;;  %v3396_v15 = vld [vmem:[#allocation4 + $0x80] ss:$16 sps:$4 sm:$0xff]   ;;  %v3397_v16 = vld [vmem:[#allocation4 + $0x88] ss:$16 sps:$4 sm:$0xff]  }
  0x50   :  { %v3398_v17 = vld [vmem:[#allocation4 + $0x64] ss:$16 sps:$4 sm:$0xff]   ;;  %v3400_v18 = vld [vmem:[#allocation4 + $0x6c] ss:$16 sps:$4 sm:$0xff]   ;;  %v3402_v19 = vld [vmem:[#allocation4 + $0x60] ss:$16 sps:$4 sm:$0xff]  }
  0x51   :  { %306 = vmatpush1.bf16.msra.mxu0 %v3384_v7  ;;  %347 = vmatpush1.bf16.msra.mxu1 %v3385_v8  ;;  %v3403_v20 = vld [vmem:[#allocation4 + $0x68] ss:$16 sps:$4 sm:$0xff]   ;;  %v3404_v21 = vld [vmem:[#allocation4 + $0x44] ss:$16 sps:$4 sm:$0xff]   ;;  %v3406_v22 = vld [vmem:[#allocation4 + $0x4c] ss:$16 sps:$4 sm:$0xff]  }
  0x52   :  { %307 = vmatprep.subr.bf16.mxu0 %v3386_v9  ;;  %348 = vmatprep.subr.bf16.mxu1 %v3388_v10  ;;  %v3408_v23 = vld [vmem:[#allocation4 + $0x40] ss:$16 sps:$4 sm:$0xff]   ;;  %v3409_v24 = vld [vmem:[#allocation4 + $0x48] ss:$16 sps:$4 sm:$0xff]   ;;  %v3410_v25 = vld [vmem:[#allocation4 + $0x24] ss:$16 sps:$4 sm:$0xff]  }
  0x53   :  { %v3412_v26 = vld [vmem:[#allocation4 + $0x2c] ss:$16 sps:$4 sm:$0xff]   ;;  %v3414_v27 = vld [vmem:[#allocation4 + $0x20] ss:$16 sps:$4 sm:$0xff]   ;;  %v3415_v28 = vld [vmem:[#allocation4 + $0x28] ss:$16 sps:$4 sm:$0xff]  }
  0x54   :  { %v3416_v29 = vld [vmem:[#allocation4 + $0x4] ss:$16 sps:$4 sm:$0xff]   ;;  %v3418_v30 = vld [vmem:[#allocation4 + $0xc] ss:$16 sps:$4 sm:$0xff]   ;;  %v3420_v31 = vld [vmem:[#allocation4] ss:$16 sps:$4 sm:$0xff]  }
  0x55   :  { %308 = vmatpush1.bf16.msra.mxu0 %v3390_v11  ;;  %349 = vmatpush1.bf16.msra.mxu1 %v3391_v12  ;;  %v3421_v32 = vld [vmem:[#allocation4 + $0x8] ss:$16 sps:$4 sm:$0xff]   ;;  %v3424_v35 = vld [vmem:[#allocation6 + $0xe4] ss:$16 sps:$4 sm:$0xff]   ;;  %v3422_v37 = vld [vmem:[#allocation6 + $0xe0] ss:$16 sps:$4 sm:$0xff]  }
  0x56   :  { %309 = vmatprep.subr.bf16.mxu0 %v3392_v13  ;;  %350 = vmatprep.subr.bf16.mxu1 %v3394_v14  ;;  %v3427_v36 = vld [vmem:[#allocation6 + $0x2e4] ss:$16 sps:$4 sm:$0xff]   ;;  %v3425_v38 = vld [vmem:[#allocation6 + $0x2e0] ss:$16 sps:$4 sm:$0xff]  }
  0x57   :  { %v3430_v39 = vld [vmem:[#allocation6 + $0xc4] ss:$16 sps:$4 sm:$0xff]   ;;  %v3428_v41 = vld [vmem:[#allocation6 + $0xc0] ss:$16 sps:$4 sm:$0xff]  }
  0x58   :  { %v3433_v40 = vld [vmem:[#allocation6 + $0x2c4] ss:$16 sps:$4 sm:$0xff]   ;;  %v3431_v42 = vld [vmem:[#allocation6 + $0x2c0] ss:$16 sps:$4 sm:$0xff]  }
  0x59   :  { %310 = vmatpush1.bf16.msra.mxu0 %v3396_v15  ;;  %351 = vmatpush1.bf16.msra.mxu1 %v3397_v16  ;;  %v3436_v43 = vld [vmem:[#allocation6 + $0xa4] ss:$16 sps:$4 sm:$0xff]   ;;  %v3434_v45 = vld [vmem:[#allocation6 + $0xa0] ss:$16 sps:$4 sm:$0xff]  }
  0x5a   :  { %311 = vmatprep.subr.bf16.mxu0 %v3398_v17  ;;  %352 = vmatprep.subr.bf16.mxu1 %v3400_v18  ;;  %v3439_v44 = vld [vmem:[#allocation6 + $0x2a4] ss:$16 sps:$4 sm:$0xff]   ;;  %v3437_v46 = vld [vmem:[#allocation6 + $0x2a0] ss:$16 sps:$4 sm:$0xff]  }
  0x5b   :  { %v3442_v47 = vld [vmem:[#allocation6 + $0x84] ss:$16 sps:$4 sm:$0xff]   ;;  %v3440_v49 = vld [vmem:[#allocation6 + $0x80] ss:$16 sps:$4 sm:$0xff]  }
  0x5c   :  { %v3445_v48 = vld [vmem:[#allocation6 + $0x284] ss:$16 sps:$4 sm:$0xff]   ;;  %v3443_v50 = vld [vmem:[#allocation6 + $0x280] ss:$16 sps:$4 sm:$0xff]  }
  0x5d   :  { %312 = vmatpush1.bf16.msra.mxu0 %v3402_v19  ;;  %353 = vmatpush1.bf16.msra.mxu1 %v3403_v20  ;;  %v3448_v51 = vld [vmem:[#allocation6 + $0x64] ss:$16 sps:$4 sm:$0xff]   ;;  %v3446_v53 = vld [vmem:[#allocation6 + $0x60] ss:$16 sps:$4 sm:$0xff]  }
  0x5e   :  { %313 = vmatprep.subr.bf16.mxu0 %v3404_v21  ;;  %354 = vmatprep.subr.bf16.mxu1 %v3406_v22  ;;  %v3451_v52 = vld [vmem:[#allocation6 + $0x264] ss:$16 sps:$4 sm:$0xff]   ;;  %v3449_v54 = vld [vmem:[#allocation6 + $0x260] ss:$16 sps:$4 sm:$0xff]  }
  0x5f   :  { %v3454_v55 = vld [vmem:[#allocation6 + $0x44] ss:$16 sps:$4 sm:$0xff]   ;;  %v3452_v57 = vld [vmem:[#allocation6 + $0x40] ss:$16 sps:$4 sm:$0xff]  }
  0x60   :  { %v3457_v56 = vld [vmem:[#allocation6 + $0x244] ss:$16 sps:$4 sm:$0xff]   ;;  %v3455_v58 = vld [vmem:[#allocation6 + $0x240] ss:$16 sps:$4 sm:$0xff]  }
  0x61   :  { %314 = vmatpush1.bf16.msra.mxu0 %v3408_v23  ;;  %355 = vmatpush1.bf16.msra.mxu1 %v3409_v24  ;;  %v3460_v59 = vld [vmem:[#allocation6 + $0x24] ss:$16 sps:$4 sm:$0xff]   ;;  %v3458_v61 = vld [vmem:[#allocation6 + $0x20] ss:$16 sps:$4 sm:$0xff]  }
  0x62   :  { %315 = vmatprep.subr.bf16.mxu0 %v3410_v25  ;;  %356 = vmatprep.subr.bf16.mxu1 %v3412_v26  ;;  %v3463_v60 = vld [vmem:[#allocation6 + $0x224] ss:$16 sps:$4 sm:$0xff]   ;;  %v3461_v62 = vld [vmem:[#allocation6 + $0x220] ss:$16 sps:$4 sm:$0xff]  }
  0x63   :  { %v3466_v63 = vld [vmem:[#allocation6 + $0x4] ss:$16 sps:$4 sm:$0xff]   ;;  %v3464_v1 = vld [vmem:[#allocation6] ss:$16 sps:$4 sm:$0xff]  }
  0x64   :  { %v3469_v0 = vld [vmem:[#allocation6 + $0x204] ss:$16 sps:$4 sm:$0xff]   ;;  %v3467_v2 = vld [vmem:[#allocation6 + $0x200] ss:$16 sps:$4 sm:$0xff]  }
  0x65   :  { %316 = vmatpush1.bf16.msra.mxu0 %v3414_v27  ;;  %357 = vmatpush1.bf16.msra.mxu1 %v3415_v28  ;;  %v3472_v3 = vld [vmem:[#allocation6 + $0x1e4] ss:$16 sps:$4 sm:$0xff]   ;;  %v3470_v5 = vld [vmem:[#allocation6 + $0x1e0] ss:$16 sps:$4 sm:$0xff]  }
  0x66   :  { %317 = vmatprep.subr.bf16.mxu0 %v3416_v29  ;;  %358 = vmatprep.subr.bf16.mxu1 %v3418_v30  ;;  %v3475_v4 = vld [vmem:[#allocation6 + $0x3e4] ss:$16 sps:$4 sm:$0xff]   ;;  %v3473_v6 = vld [vmem:[#allocation6 + $0x3e0] ss:$16 sps:$4 sm:$0xff]  }
  0x67   :  { %v3478_v7 = vld [vmem:[#allocation6 + $0x1c4] ss:$16 sps:$4 sm:$0xff]   ;;  %v3476_v9 = vld [vmem:[#allocation6 + $0x1c0] ss:$16 sps:$4 sm:$0xff]  }
  0x68   :  { %v3481_v8 = vld [vmem:[#allocation6 + $0x3c4] ss:$16 sps:$4 sm:$0xff]   ;;  %v3479_v10 = vld [vmem:[#allocation6 + $0x3c0] ss:$16 sps:$4 sm:$0xff]  }
  0x69   :  { %318 = vmatpush1.bf16.msra.mxu0 %v3420_v31  ;;  %359 = vmatpush1.bf16.msra.mxu1 %v3421_v32  ;;  %v3484_v11 = vld [vmem:[#allocation6 + $0x1a4] ss:$16 sps:$4 sm:$0xff]   ;;  %v3482_v13 = vld [vmem:[#allocation6 + $0x1a0] ss:$16 sps:$4 sm:$0xff]  }
  0x6a   :  { %1286 = vmatprep.subr.bf16.mxu0 %v3424_v35  ;;  %1327 = vmatprep.subr.bf16.mxu1 %v3427_v36  ;;  %v3487_v12 = vld [vmem:[#allocation6 + $0x3a4] ss:$16 sps:$4 sm:$0xff]   ;;  %v3485_v14 = vld [vmem:[#allocation6 + $0x3a0] ss:$16 sps:$4 sm:$0xff]   ;;  %v3520_v35 = vld [vmem:[#allocation6 + $0xec] ss:$16 sps:$4 sm:$0xff]  }
  0x6b   :  { %v3490_v15 = vld [vmem:[#allocation6 + $0x184] ss:$16 sps:$4 sm:$0xff]   ;;  %v3488_v17 = vld [vmem:[#allocation6 + $0x180] ss:$16 sps:$4 sm:$0xff]   ;;  %v3523_v36 = vld [vmem:[#allocation6 + $0x2ec] ss:$16 sps:$4 sm:$0xff]  }
  0x6c   :  { %336 = vmatmul.mubr.bf16.vlgmr.msra.gmra.mxu0 %v110_v34  ;;  %377 = vmatmul.mubr.bf16.vlgmr.msra.gmra.mxu1 %v110_v34  ;;  %v3493_v16 = vld [vmem:[#allocation6 + $0x384] ss:$16 sps:$4 sm:$0xff]   ;;  %v3491_v18 = vld [vmem:[#allocation6 + $0x380] ss:$16 sps:$4 sm:$0xff]  }
  0x6d   :  { %1287 = vmatpush1.bf16.msra.mxu0 %v3422_v37  ;;  %1328 = vmatpush1.bf16.msra.mxu1 %v3425_v38  ;;  %v3496_v19 = vld [vmem:[#allocation6 + $0x164] ss:$16 sps:$4 sm:$0xff]   ;;  %v3494_v21 = vld [vmem:[#allocation6 + $0x160] ss:$16 sps:$4 sm:$0xff]  }
  0x6e   :  { %1288 = vmatprep.subr.bf16.mxu0 %v3430_v39  ;;  %1329 = vmatprep.subr.bf16.mxu1 %v3433_v40  ;;  %v3499_v20 = vld [vmem:[#allocation6 + $0x364] ss:$16 sps:$4 sm:$0xff]   ;;  %v3497_v22 = vld [vmem:[#allocation6 + $0x360] ss:$16 sps:$4 sm:$0xff]  }
  0x6f   :  { %v3500_v23 = vld [vmem:[#allocation6 + $0x140] ss:$16 sps:$4 sm:$0xff]   ;;  %v3502_v24 = vld [vmem:[#allocation6 + $0x144] ss:$16 sps:$4 sm:$0xff]  }
  0x70   :  { %v3503_v25 = vld [vmem:[#allocation6 + $0x340] ss:$16 sps:$4 sm:$0xff]   ;;  %v3505_v26 = vld [vmem:[#allocation6 + $0x344] ss:$16 sps:$4 sm:$0xff]  }
  0x71   :  { %1289 = vmatpush1.bf16.msra.mxu0 %v3428_v41  ;;  %1330 = vmatpush1.bf16.msra.mxu1 %v3431_v42  ;;  %v3508_v27 = vld [vmem:[#allocation6 + $0x124] ss:$16 sps:$4 sm:$0xff]   ;;  %v3506_v29 = vld [vmem:[#allocation6 + $0x120] ss:$16 sps:$4 sm:$0xff]  }
  0x72   :  { %1290 = vmatprep.subr.bf16.mxu0 %v3436_v43  ;;  %1331 = vmatprep.subr.bf16.mxu1 %v3439_v44  ;;  %v3511_v28 = vld [vmem:[#allocation6 + $0x324] ss:$16 sps:$4 sm:$0xff]   ;;  %v3509_v30 = vld [vmem:[#allocation6 + $0x320] ss:$16 sps:$4 sm:$0xff]  }
  0x73   :  { %v3514_v31 = vld [vmem:[#allocation6 + $0x104] ss:$16 sps:$4 sm:$0xff]   ;;  %v3512_v32 = vld [vmem:[#allocation6 + $0x100] ss:$16 sps:$4 sm:$0xff]  }
  0x74   :  { %v3517_v33 = vld [vmem:[#allocation6 + $0x304] ss:$16 sps:$4 sm:$0xff]   ;;  %v3515_v34 = vld [vmem:[#allocation6 + $0x300] ss:$16 sps:$4 sm:$0xff]  }
  0x75   :  { %1291 = vmatpush1.bf16.msra.mxu0 %v3434_v45  ;;  %1332 = vmatpush1.bf16.msra.mxu1 %v3437_v46 }
  0x76   :  { %1292 = vmatprep.subr.bf16.mxu0 %v3442_v47  ;;  %1333 = vmatprep.subr.bf16.mxu1 %v3445_v48 }
  0x79   :  { %1293 = vmatpush1.bf16.msra.mxu0 %v3440_v49  ;;  %1334 = vmatpush1.bf16.msra.mxu1 %v3443_v50 }
  0x7a   :  { %1294 = vmatprep.subr.bf16.mxu0 %v3448_v51  ;;  %1335 = vmatprep.subr.bf16.mxu1 %v3451_v52 }
  0x7d   :  { %1295 = vmatpush1.bf16.msra.mxu0 %v3446_v53  ;;  %1336 = vmatpush1.bf16.msra.mxu1 %v3449_v54 }
  0x7e   :  { %1296 = vmatprep.subr.bf16.mxu0 %v3454_v55  ;;  %1337 = vmatprep.subr.bf16.mxu1 %v3457_v56 }
  0x81   :  { %1297 = vmatpush1.bf16.msra.mxu0 %v3452_v57  ;;  %1338 = vmatpush1.bf16.msra.mxu1 %v3455_v58 }
  0x82   :  { %1298 = vmatprep.subr.bf16.mxu0 %v3460_v59  ;;  %1339 = vmatprep.subr.bf16.mxu1 %v3463_v60 }
  0x85   :  { %1299 = vmatpush1.bf16.msra.mxu0 %v3458_v61  ;;  %1340 = vmatpush1.bf16.msra.mxu1 %v3461_v62 }
  0x86   :  { %1300 = vmatprep.subr.bf16.mxu0 %v3466_v63  ;;  %1341 = vmatprep.subr.bf16.mxu1 %v3469_v0 }
  0x89   :  { %1301 = vmatpush1.bf16.msra.mxu0 %v3464_v1  ;;  %1342 = vmatpush1.bf16.msra.mxu1 %v3467_v2 }
  0x8a   :  { %1302 = vmatprep.subr.bf16.mxu0 %v3472_v3  ;;  %1343 = vmatprep.subr.bf16.mxu1 %v3475_v4 }
  0x8d   :  { %1303 = vmatpush2.bf16.msra.mxu0 %v3470_v5  ;;  %1344 = vmatpush2.bf16.msra.mxu1 %v3473_v6 }
  0x8e   :  { %1304 = vmatprep.subr.bf16.mxu0 %v3478_v7  ;;  %1345 = vmatprep.subr.bf16.mxu1 %v3481_v8 }
  0x91   :  { %1305 = vmatpush2.bf16.msra.mxu0 %v3476_v9  ;;  %1346 = vmatpush2.bf16.msra.mxu1 %v3479_v10 }
  0x92   :  { %1306 = vmatprep.subr.bf16.mxu0 %v3484_v11  ;;  %1347 = vmatprep.subr.bf16.mxu1 %v3487_v12 }
  0x95   :  { %1307 = vmatpush2.bf16.msra.mxu0 %v3482_v13  ;;  %1348 = vmatpush2.bf16.msra.mxu1 %v3485_v14 }
  0x96   :  { %1308 = vmatprep.subr.bf16.mxu0 %v3490_v15  ;;  %1349 = vmatprep.subr.bf16.mxu1 %v3493_v16 }
  0x99   :  { %1309 = vmatpush2.bf16.msra.mxu0 %v3488_v17  ;;  %1350 = vmatpush2.bf16.msra.mxu1 %v3491_v18 }
  0x9a   :  { %1310 = vmatprep.subr.bf16.mxu0 %v3496_v19  ;;  %1351 = vmatprep.subr.bf16.mxu1 %v3499_v20 }
  0x9d   :  { %1311 = vmatpush2.bf16.msra.mxu0 %v3494_v21  ;;  %1352 = vmatpush2.bf16.msra.mxu1 %v3497_v22 }
  0x9e   :  { %1312 = vmatprep.subr.bf16.mxu0 %v3502_v24  ;;  %1353 = vmatprep.subr.bf16.mxu1 %v3505_v26 }
  0xa1   :  { %1313 = vmatpush2.bf16.msra.mxu0 %v3500_v23  ;;  %1354 = vmatpush2.bf16.msra.mxu1 %v3503_v25 }
  0xa2   :  { %1314 = vmatprep.subr.bf16.mxu0 %v3508_v27  ;;  %1355 = vmatprep.subr.bf16.mxu1 %v3511_v28 }
  0xa5   :  { %1315 = vmatpush2.bf16.msra.mxu0 %v3506_v29  ;;  %1356 = vmatpush2.bf16.msra.mxu1 %v3509_v30 }
  0xa6   :  { %1316 = vmatprep.subr.bf16.mxu0 %v3514_v31  ;;  %1357 = vmatprep.subr.bf16.mxu1 %v3517_v33 }
  0xa9   :  { %1317 = vmatpush2.bf16.msra.mxu0 %v3512_v32  ;;  %1358 = vmatpush2.bf16.msra.mxu1 %v3515_v34 }
  0xaa   :  { %1368 = vmatprep.subr.bf16.mxu0 %v3520_v35  ;;  %1409 = vmatprep.subr.bf16.mxu1 %v3523_v36 }
 0x12c   :  { %v337_v37 = vpop.f32.mrf.mxu0  ;;  %v378_v38 = vpop.f32.mrf.mxu1 }
 0x12d   :  { %v385_v39 = vrot.slane %v337_v37, 4  ;;  %v397_v40 = vrot.slane %v378_v38, 4 }
 0x12e   :  { %v339_v41 = vpop.f32.mrf.mxu0  ;;  %v380_v42 = vpop.f32.mrf.mxu1 }
 0x12f   :  { %v386_v43 = vadd.f32 %v385_v39, %v337_v37  ;;  %v398_v44 = vadd.f32 %v397_v40, %v378_v38  ;;  %v391_v45 = vrot.slane %v339_v41, 4  ;;  %v403_v46 = vrot.slane %v380_v42, 4 }
 0x130   :  { %v341_v47 = vpop.f32.mrf.mxu0  ;;  %v382_v48 = vpop.f32.mrf.mxu1 }
 0x131   :  { %v387_v49 = vrot.slane %v386_v43, 2  ;;  %v399_v50 = vrot.slane %v398_v44, 2  ;;  %v392_v51 = vadd.f32 %v391_v45, %v339_v41  ;;  %v404_v52 = vadd.f32 %v403_v46, %v380_v42 }
 0x132   :  { %v342_v53 = vpop.f32.mrf.mxu0  ;;  %v383_v54 = vpop.f32.mrf.mxu1 }
 0x133   :  { %v388_v55 = vadd.f32 %v387_v49, %v386_v43  ;;  %v400_v56 = vadd.f32 %v399_v50, %v398_v44  ;;  %v393_v57 = vrot.slane %v392_v51, 2  ;;  %v405_v58 = vrot.slane %v404_v52, 2  ;;  %v4094_v54 = vld [vmem:[#allocation10 + $0x10] sm:$0x3f] }
 0x134   :  { %v462_v49 = vlaneseq }
 0x135   :  { %v389_v59 = vrot.slane %v388_v55, 1  ;;  %v401_v60 = vrot.slane %v400_v56, 1  ;;  %v394_v61 = vadd.f32 %v393_v57, %v392_v51  ;;  %v406_v62 = vadd.f32 %v405_v58, %v404_v52  ;;  %v4090_v51 = vld [vmem:[#allocation10] sm:$0x3f] }
 0x136   :  { %v4088_v50 = vshrl.u32 %v462_v49, 7  ;;  %v3548_v49 = vld [vmem:[#allocation6 + $0x48] ss:$16 sps:$4 sm:$0xff]  }
 0x137   :  { %v390_v63 = vadd.f32 %v389_v59, %v388_v55  ;;  %v402_v0 = vadd.f32 %v401_v60, %v400_v56  ;;  %v395_v1 = vrot.slane %v394_v61, 1  ;;  %v407_v2 = vrot.slane %v406_v62, 1  ;;  %v4096_v56 = vld [vmem:[#allocation10 + $0x8] sm:$0x3f]  ;;  %v4099_v59 = vld [vmem:[#allocation10 + $0x18] sm:$0x3f] }
 0x138   :  { %v464_v52 = vsub.s32 0, %v4088_v50  ;;  %v484_v53 = vsub.s32 1, %v4088_v50 }
 0x139   :  { %v410_v3 = vmul.f32 0.125, %v390_v63  ;;  %v412_v4 = vmul.f32 0.125, %v402_v0  ;;  %v396_v5 = vadd.f32 %v395_v1, %v394_v61  ;;  %v408_v6 = vadd.f32 %v407_v2, %v406_v62 }
 0x13a   :  { %v485_v0 = vrot.slane %v4090_v51, %v484_v53 }
 0x13b   :  { %v4072_v7 = vsub.f32 %v337_v37, %v410_v3  ;;  %v4074_v8 = vsub.f32 %v378_v38, %v412_v4  ;;  %v411_v9 = vmul.f32 0.125, %v396_v5  ;;  %v413_v10 = vmul.f32 0.125, %v408_v6 }
 0x13c   :  { %v493_v3 = vrot.slane %v4094_v54, %v484_v53 }
 0x13d   :  { %v418_v11 = vmul.f32 %v4072_v7, %v4072_v7  ;;  %v420_v12 = vmul.f32 %v4074_v8, %v4074_v8  ;;  %v4080_v13 = vsub.f32 %v339_v41, %v411_v9  ;;  %v4082_v14 = vsub.f32 %v380_v42, %v413_v10 }
 0x13e   :  { %v489_v9 = vrot.slane %v4096_v56, %v484_v53 }
 0x13f   :  { %v422_v15 = vrot.slane %v418_v11, 4  ;;  %v434_v16 = vrot.slane %v420_v12, 4  ;;  %v419_v17 = vmul.f32 %v4080_v13, %v4080_v13  ;;  %v421_v18 = vmul.f32 %v4082_v14, %v4082_v14 }
 0x141   :  { %v423_v19 = vadd.f32 %v422_v15, %v418_v11  ;;  %v435_v20 = vadd.f32 %v434_v16, %v420_v12  ;;  %v428_v21 = vrot.slane %v419_v17, 4  ;;  %v440_v22 = vrot.slane %v421_v18, 4 }
 0x142   :  { %v497_v12 = vrot.slane %v4099_v59, %v484_v53  ;;  %v3556_v53 = vld [vmem:[#allocation6 + $0x2c] ss:$16 sps:$4 sm:$0xff]  }
 0x143   :  { %v424_v23 = vrot.slane %v423_v19, 2  ;;  %v436_v24 = vrot.slane %v435_v20, 2  ;;  %v429_v25 = vadd.f32 %v428_v21, %v419_v17  ;;  %v441_v26 = vadd.f32 %v440_v22, %v421_v18 }
 0x145   :  { %v425_v27 = vadd.f32 %v424_v23, %v423_v19  ;;  %v437_v28 = vadd.f32 %v436_v24, %v435_v20  ;;  %v430_v29 = vrot.slane %v429_v25, 2  ;;  %v442_v30 = vrot.slane %v441_v26, 2 }
 0x147   :  { %v426_v31 = vrot.slane %v425_v27, 1  ;;  %v438_v32 = vrot.slane %v437_v28, 1  ;;  %v431_v33 = vadd.f32 %v430_v29, %v429_v25  ;;  %v443_v34 = vadd.f32 %v442_v30, %v441_v26  ;;  %v3521_v29 = vld [vmem:[#allocation6 + $0x2e8] ss:$16 sps:$4 sm:$0xff]  }
 0x149   :  { %v427_v35 = vadd.f32 %v426_v31, %v425_v27  ;;  %v439_v36 = vadd.f32 %v438_v32, %v437_v28  ;;  %v432_v37 = vrot.slane %v431_v33, 1  ;;  %v444_v38 = vrot.slane %v443_v34, 1  ;;  %v3518_v28 = vld [vmem:[#allocation6 + $0xe8] ss:$16 sps:$4 sm:$0xff]   ;;  %v3526_v31 = vld [vmem:[#allocation6 + $0xcc] ss:$16 sps:$4 sm:$0xff]  }
 0x14a   :  { %v3529_v32 = vld [vmem:[#allocation6 + $0x2cc] ss:$16 sps:$4 sm:$0xff]  }
 0x14b   :  { %v446_v39 = vmul.f32 0.125, %v427_v35  ;;  %v448_v40 = vmul.f32 0.125, %v439_v36  ;;  %v433_v41 = vadd.f32 %v432_v37, %v431_v33  ;;  %v445_v42 = vadd.f32 %v444_v38, %v443_v34  ;;  %v3524_v33 = vld [vmem:[#allocation6 + $0xc8] ss:$16 sps:$4 sm:$0xff]   ;;  %v3532_v35 = vld [vmem:[#allocation6 + $0xac] ss:$16 sps:$4 sm:$0xff]  }
 0x14c   :  { %v3527_v34 = vld [vmem:[#allocation6 + $0x2c8] ss:$16 sps:$4 sm:$0xff]   ;;  %v3535_v36 = vld [vmem:[#allocation6 + $0x2ac] ss:$16 sps:$4 sm:$0xff]  }
 0x14d   :  { %v450_v43 = vadd.f32 1e-05, %v446_v39  ;;  %v452_v44 = vadd.f32 1e-05, %v448_v40  ;;  %v447_v45 = vmul.f32 0.125, %v433_v41  ;;  %v449_v46 = vmul.f32 0.125, %v445_v42 }
 0x14e   :  { %v3530_v37 = vld [vmem:[#allocation6 + $0xa8] ss:$16 sps:$4 sm:$0xff]   ;;  %v3538_v39 = vld [vmem:[#allocation6 + $0x8c] ss:$16 sps:$4 sm:$0xff]  }
 0x14f   :  { %3838 = vrsqrt.f32 %v450_v43  ;;  %v451_v47 = vadd.f32 1e-05, %v447_v45  ;;  %v453_v48 = vadd.f32 1e-05, %v449_v46  ;;  %v3533_v38 = vld [vmem:[#allocation6 + $0x2a8] ss:$16 sps:$4 sm:$0xff]  }
 0x150   :  { %3840 = vrsqrt.f32 %v452_v44  ;;  %v3541_v40 = vld [vmem:[#allocation6 + $0x28c] ss:$16 sps:$4 sm:$0xff]   ;;  %v3536_v41 = vld [vmem:[#allocation6 + $0x88] ss:$16 sps:$4 sm:$0xff]  }
 0x151   :  { %3842 = vrsqrt.f32 %v451_v47  ;;  %v3539_v42 = vld [vmem:[#allocation6 + $0x288] ss:$16 sps:$4 sm:$0xff]   ;;  %v3544_v43 = vld [vmem:[#allocation6 + $0x6c] ss:$16 sps:$4 sm:$0xff]  }
 0x152   :  { %3844 = vrsqrt.f32 %v453_v48  ;;  %v3547_v44 = vld [vmem:[#allocation6 + $0x26c] ss:$16 sps:$4 sm:$0xff]   ;;  %v3542_v45 = vld [vmem:[#allocation6 + $0x68] ss:$16 sps:$4 sm:$0xff]  }
 0x153   :  { %v3545_v46 = vld [vmem:[#allocation6 + $0x268] ss:$16 sps:$4 sm:$0xff]   ;;  %v3550_v47 = vld [vmem:[#allocation6 + $0x4c] ss:$16 sps:$4 sm:$0xff]  }
 0x154   :  { %v3553_v48 = vld [vmem:[#allocation6 + $0x24c] ss:$16 sps:$4 sm:$0xff]  }
 0x15c   :  { %v3839_v55 = vpop.eup %3838 }
 0x15d   :  { %v3841_v57 = vpop.eup %3840  ;;  %v458_v58 = vmul.f32 %v3839_v55, %v4090_v51  ;;  %v3559_v55 = vld [vmem:[#allocation6 + $0x22c] ss:$16 sps:$4 sm:$0xff]  }
 0x15e   :  { %v3843_v60 = vpop.eup %3842  ;;  %v460_v61 = vmul.f32 %v3841_v57, %v4094_v54  ;;  %v3554_v57 = vld [vmem:[#allocation6 + $0x28] ss:$16 sps:$4 sm:$0xff]  }
 0x15f   :  { %v3845_v62 = vpop.eup %3844  ;;  %v465_v63 = vrot.slane %v458_v58, %v464_v52  ;;  %v459_v1 = vmul.f32 %v3843_v60, %v4096_v56  ;;  %v3557_v58 = vld [vmem:[#allocation6 + $0x228] ss:$16 sps:$4 sm:$0xff]   ;;  %v3562_v60 = vld [vmem:[#allocation6 + $0xc] ss:$16 sps:$4 sm:$0xff]  }
 0x160   :  { %v473_v2 = vrot.slane %v460_v61, %v464_v52  ;;  %v461_v4 = vmul.f32 %v3845_v62, %v4099_v59  ;;  %v3565_v61 = vld [vmem:[#allocation6 + $0x20c] ss:$16 sps:$4 sm:$0xff]   ;;  %v3560_v62 = vld [vmem:[#allocation6 + $0x8] ss:$16 sps:$4 sm:$0xff]  }
 0x161   :  { %v478_v5 = vmul.f32 %v465_v63, %v4072_v7  ;;  %v469_v6 = vrot.slane %v459_v1, %v464_v52  ;;  %v3563_v63 = vld [vmem:[#allocation6 + $0x208] ss:$16 sps:$4 sm:$0xff]   ;;  %v3571_v1 = vld [vmem:[#allocation6 + $0x3ec] ss:$16 sps:$4 sm:$0xff]  }
 0x162   :  { %v480_v10 = vmul.f32 %v473_v2, %v4074_v8  ;;  %v477_v11 = vrot.slane %v461_v4, %v464_v52  ;;  %v3551_v52 = vld [vmem:[#allocation6 + $0x248] ss:$16 sps:$4 sm:$0xff]   ;;  %v3574_v4 = vld [vmem:[#allocation6 + $0x1cc] ss:$16 sps:$4 sm:$0xff]  }
 0x163   :  { %v498_v15 = vadd.f32 %v485_v0, %v478_v5  ;;  %v479_v16 = vmul.f32 %v469_v6, %v4080_v13  ;;  %v3568_v0 = vld [vmem:[#allocation6 + $0x1ec] ss:$16 sps:$4 sm:$0xff]   ;;  %v3566_v2 = vld [vmem:[#allocation6 + $0x1e8] ss:$16 sps:$4 sm:$0xff]  }
 0x164   :  { %v500_v17 = vadd.f32 %v493_v3, %v480_v10  ;;  %v481_v18 = vmul.f32 %v477_v11, %v4082_v14  ;;  %v3569_v3 = vld [vmem:[#allocation6 + $0x3e8] ss:$16 sps:$4 sm:$0xff]   ;;  %v3577_v5 = vld [vmem:[#allocation6 + $0x3cc] ss:$16 sps:$4 sm:$0xff]  }
 0x165   :  { %v506_v19 = vmul.f32 0.01, %v498_v15  ;;  %v499_v20 = vadd.f32 %v489_v9, %v479_v16  ;;  %vm502_vm0 = vcmp.gt.f32.partialorder %v498_v15, 0.0  ;;  %v3572_v6 = vld [vmem:[#allocation6 + $0x1c8] ss:$16 sps:$4 sm:$0xff]  }
 0x166   :  { %v508_v21 = vmul.f32 0.01, %v500_v17  ;;  %v501_v22 = vadd.f32 %v497_v12, %v481_v18  ;;  %vm504_vm1 = vcmp.gt.f32.partialorder %v500_v17, 0.0  ;;  %v3575_v9 = vld [vmem:[#allocation6 + $0x3c8] ss:$16 sps:$4 sm:$0xff]  }
 0x167   :  { %vm503_vm2 = vcmp.gt.f32.partialorder %v499_v20, 0.0  ;;  %v507_v7 = vmul.f32 0.01, %v499_v20  ;;  %v510_v8 = vsel %vm502_vm0, %v498_v15, %v506_v19  ;;  %v3580_v10 = vld [vmem:[#allocation6 + $0x1ac] ss:$16 sps:$4 sm:$0xff]  }
 0x168   :  { %vm505_vm3 = vcmp.gt.f32.partialorder %v501_v22, 0.0  ;;  %v509_v23 = vmul.f32 0.01, %v501_v22  ;;  %v512_v25 = vsel %vm504_vm1, %v500_v17, %v508_v21  ;;  %v4112_v30 = vpack.c.bf16 %v510_v8, %v510_v8  ;;  %v3583_v11 = vld [vmem:[#allocation6 + $0x3ac] ss:$16 sps:$4 sm:$0xff]  }
 0x169   :  { %v511_v24 = vsel %vm503_vm2, %v499_v20, %v507_v7  ;;  %v4114_v14 = vpack.c.bf16 %v512_v25, %v512_v25  ;;  %v3578_v12 = vld [vmem:[#allocation6 + $0x1a8] ss:$16 sps:$4 sm:$0xff]   ;;  %v3586_v16 = vld [vmem:[#allocation6 + $0x18c] ss:$16 sps:$4 sm:$0xff]  }
 0x16a   :  { %v515_v26 = vpack.c.bf16 %v511_v24, %v511_v24  ;;  %v513_v27 = vsel %vm505_vm3, %v501_v22, %v509_v23  ;;  %v3581_v15 = vld [vmem:[#allocation6 + $0x3a8] ss:$16 sps:$4 sm:$0xff]   ;;  %v3589_v17 = vld [vmem:[#allocation6 + $0x38c] ss:$16 sps:$4 sm:$0xff]  }
 0x16b   :  { %v517_v13 = vpack.c.bf16 %v513_v27, %v513_v27  ;;  %v3584_v18 = vld [vmem:[#allocation6 + $0x188] ss:$16 sps:$4 sm:$0xff]   ;;  %v3592_v20 = vld [vmem:[#allocation6 + $0x16c] ss:$16 sps:$4 sm:$0xff]  }
 0x16c   :  { %1318 = vmatprep.mubr.bf16.mxu0 %v515_v26  ;;  %v3587_v19 = vld [vmem:[#allocation6 + $0x388] ss:$16 sps:$4 sm:$0xff]   ;;  %v3595_v21 = vld [vmem:[#allocation6 + $0x36c] ss:$16 sps:$4 sm:$0xff]  }
 0x16d   :  { %1359 = vmatprep.mubr.bf16.mxu1 %v517_v13  ;;  %1319 = vmatmul.mubr.bf16.vlgmr.msra.gmra.mxu0 %v4112_v30  ;;  %v3590_v22 = vld [vmem:[#allocation6 + $0x168] ss:$16 sps:$4 sm:$0xff]   ;;  %v3598_v23 = vld [vmem:[#allocation6 + $0x14c] ss:$16 sps:$4 sm:$0xff]  }
 0x16e   :  { %1360 = vmatmul.mubr.bf16.vlgmr.msra.gmra.mxu1 %v4114_v14  ;;  %1369 = vmatpush1.bf16.msra.mxu0 %v3518_v28  ;;  %v3593_v7 = vld [vmem:[#allocation6 + $0x368] ss:$16 sps:$4 sm:$0xff]   ;;  %v3601_v8 = vld [vmem:[#allocation6 + $0x34c] ss:$16 sps:$4 sm:$0xff]  }
 0x16f   :  { %1410 = vmatpush1.bf16.msra.mxu1 %v3521_v29  ;;  %1400 = vmatprep.mubr.bf16.mxu0 %v515_v26  ;;  %v3596_v24 = vld [vmem:[#allocation6 + $0x148] ss:$16 sps:$4 sm:$0xff]   ;;  %v3604_v26 = vld [vmem:[#allocation6 + $0x12c] ss:$16 sps:$4 sm:$0xff]  }
 0x170   :  { %1441 = vmatprep.mubr.bf16.mxu1 %v517_v13  ;;  %1370 = vmatprep.subr.bf16.mxu0 %v3526_v31  ;;  %v3599_v25 = vld [vmem:[#allocation6 + $0x348] ss:$16 sps:$4 sm:$0xff]   ;;  %v3607_v27 = vld [vmem:[#allocation6 + $0x32c] ss:$16 sps:$4 sm:$0xff]  }
 0x171   :  { %1411 = vmatprep.subr.bf16.mxu1 %v3529_v32  ;;  %v3602_v28 = vld [vmem:[#allocation6 + $0x128] ss:$16 sps:$4 sm:$0xff]   ;;  %v3610_v29 = vld [vmem:[#allocation6 + $0x10c] ss:$16 sps:$4 sm:$0xff]  }
 0x172   :  { %1371 = vmatpush1.bf16.msra.mxu0 %v3524_v33  ;;  %v3605_v13 = vld [vmem:[#allocation6 + $0x328] ss:$16 sps:$4 sm:$0xff]   ;;  %v3613_v31 = vld [vmem:[#allocation6 + $0x30c] ss:$16 sps:$4 sm:$0xff]  }
 0x173   :  { %1412 = vmatpush1.bf16.msra.mxu1 %v3527_v34  ;;  %1372 = vmatprep.subr.bf16.mxu0 %v3532_v35  ;;  %v3608_v32 = vld [vmem:[#allocation6 + $0x108] ss:$16 sps:$4 sm:$0xff]   ;;  %v3616_v34 = vld [vmem:[#allocation7 + $0xe4] ss:$16 sps:$4 sm:$0xff]   ;;  %v3614_v35 = vld [vmem:[#allocation7 + $0xe0] ss:$16 sps:$4 sm:$0xff]  }
 0x174   :  { %1413 = vmatprep.subr.bf16.mxu1 %v3535_v36  ;;  %v3611_v33 = vld [vmem:[#allocation6 + $0x308] ss:$16 sps:$4 sm:$0xff]   ;;  %v3619_v36 = vld [vmem:[#allocation7 + $0xc4] ss:$16 sps:$4 sm:$0xff]  }
 0x176   :  { %1373 = vmatpush1.bf16.msra.mxu0 %v3530_v37  ;;  %v3617_v37 = vld [vmem:[#allocation7 + $0xc0] ss:$16 sps:$4 sm:$0xff]  }
 0x177   :  { %1414 = vmatpush1.bf16.msra.mxu1 %v3533_v38  ;;  %1374 = vmatprep.subr.bf16.mxu0 %v3538_v39  ;;  %v3622_v38 = vld [vmem:[#allocation7 + $0xa4] ss:$16 sps:$4 sm:$0xff]   ;;  %v3620_v39 = vld [vmem:[#allocation7 + $0xa0] ss:$16 sps:$4 sm:$0xff]  }
 0x178   :  { %1415 = vmatprep.subr.bf16.mxu1 %v3541_v40  ;;  %v3625_v40 = vld [vmem:[#allocation7 + $0x84] ss:$16 sps:$4 sm:$0xff]  }
 0x17a   :  { %1375 = vmatpush1.bf16.msra.mxu0 %v3536_v41  ;;  %v3623_v41 = vld [vmem:[#allocation7 + $0x80] ss:$16 sps:$4 sm:$0xff]  }
 0x17b   :  { %1416 = vmatpush1.bf16.msra.mxu1 %v3539_v42  ;;  %1376 = vmatprep.subr.bf16.mxu0 %v3544_v43  ;;  %v3628_v42 = vld [vmem:[#allocation7 + $0x64] ss:$16 sps:$4 sm:$0xff]   ;;  %v3629_v43 = vld [vmem:[#allocation7 + $0x40] ss:$16 sps:$4 sm:$0xff]  }
 0x17c   :  { %1417 = vmatprep.subr.bf16.mxu1 %v3547_v44  ;;  %v3634_v44 = vld [vmem:[#allocation7 + $0x24] ss:$16 sps:$4 sm:$0xff]  }
 0x17e   :  { %1377 = vmatpush1.bf16.msra.mxu0 %v3542_v45  ;;  %v3632_v45 = vld [vmem:[#allocation7 + $0x20] ss:$16 sps:$4 sm:$0xff]  }
 0x17f   :  { %1418 = vmatpush1.bf16.msra.mxu1 %v3545_v46  ;;  %1378 = vmatprep.subr.bf16.mxu0 %v3550_v47  ;;  %v3637_v46 = vld [vmem:[#allocation7 + $0x4] ss:$16 sps:$4 sm:$0xff]   ;;  %v3635_v47 = vld [vmem:[#allocation7] ss:$16 sps:$4 sm:$0xff]  }
 0x180   :  { %1419 = vmatprep.subr.bf16.mxu1 %v3553_v48  ;;  %v3640_v48 = vld [vmem:[#allocation7 + $0x1e4] ss:$16 sps:$4 sm:$0xff]  }
 0x182   :  { %1379 = vmatpush1.bf16.msra.mxu0 %v3548_v49  ;;  %v3638_v49 = vld [vmem:[#allocation7 + $0x1e0] ss:$16 sps:$4 sm:$0xff]  }
 0x183   :  { %1420 = vmatpush1.bf16.msra.mxu1 %v3551_v52  ;;  %1380 = vmatprep.subr.bf16.mxu0 %v3556_v53  ;;  %v3643_v52 = vld [vmem:[#allocation7 + $0x1c4] ss:$16 sps:$4 sm:$0xff]   ;;  %v3641_v53 = vld [vmem:[#allocation7 + $0x1c0] ss:$16 sps:$4 sm:$0xff]  }
 0x184   :  { %1421 = vmatprep.subr.bf16.mxu1 %v3559_v55  ;;  %v3646_v55 = vld [vmem:[#allocation7 + $0x1a4] ss:$16 sps:$4 sm:$0xff]  }
 0x186   :  { %1381 = vmatpush1.bf16.msra.mxu0 %v3554_v57  ;;  %v3644_v57 = vld [vmem:[#allocation7 + $0x1a0] ss:$16 sps:$4 sm:$0xff]  }
 0x187   :  { %1422 = vmatpush1.bf16.msra.mxu1 %v3557_v58  ;;  %1382 = vmatprep.subr.bf16.mxu0 %v3562_v60  ;;  %v3649_v58 = vld [vmem:[#allocation7 + $0x184] ss:$16 sps:$4 sm:$0xff]   ;;  %v3647_v60 = vld [vmem:[#allocation7 + $0x180] ss:$16 sps:$4 sm:$0xff]  }
 0x188   :  { %1423 = vmatprep.subr.bf16.mxu1 %v3565_v61  ;;  %v3652_v61 = vld [vmem:[#allocation7 + $0x164] ss:$16 sps:$4 sm:$0xff]  }
 0x18a   :  { %1383 = vmatpush1.bf16.msra.mxu0 %v3560_v62  ;;  %v3650_v62 = vld [vmem:[#allocation7 + $0x160] ss:$16 sps:$4 sm:$0xff]  }
 0x18b   :  { %1424 = vmatpush1.bf16.msra.mxu1 %v3563_v63  ;;  %1384 = vmatprep.subr.bf16.mxu0 %v3568_v0  ;;  %v3655_v63 = vld [vmem:[#allocation7 + $0x144] ss:$16 sps:$4 sm:$0xff]   ;;  %v3653_v0 = vld [vmem:[#allocation7 + $0x140] ss:$16 sps:$4 sm:$0xff]  }
 0x18c   :  { %1425 = vmatprep.subr.bf16.mxu1 %v3571_v1  ;;  %v3656_v1 = vld [vmem:[#allocation7 + $0x120] ss:$16 sps:$4 sm:$0xff]  }
 0x18e   :  { %1385 = vmatpush2.bf16.msra.mxu0 %v3566_v2  ;;  %v3658_v2 = vld [vmem:[#allocation7 + $0x124] ss:$16 sps:$4 sm:$0xff]  }
 0x18f   :  { %1426 = vmatpush2.bf16.msra.mxu1 %v3569_v3  ;;  %1386 = vmatprep.subr.bf16.mxu0 %v3574_v4  ;;  %v3661_v3 = vld [vmem:[#allocation7 + $0x104] ss:$16 sps:$4 sm:$0xff]   ;;  %v3659_v4 = vld [vmem:[#allocation7 + $0x100] ss:$16 sps:$4 sm:$0xff]  }
 0x190   :  { %1427 = vmatprep.subr.bf16.mxu1 %v3577_v5  ;;  %v3664_v5 = vld [vmem:[#allocation7 + $0x2e4] ss:$16 sps:$4 sm:$0xff]  }
 0x192   :  { %1387 = vmatpush2.bf16.msra.mxu0 %v3572_v6  ;;  %v3662_v6 = vld [vmem:[#allocation7 + $0x2e0] ss:$16 sps:$4 sm:$0xff]  }
 0x193   :  { %1428 = vmatpush2.bf16.msra.mxu1 %v3575_v9  ;;  %1388 = vmatprep.subr.bf16.mxu0 %v3580_v10  ;;  %v3667_v9 = vld [vmem:[#allocation7 + $0xec] ss:$16 sps:$4 sm:$0xff]   ;;  %v3670_v10 = vld [vmem:[#allocation7 + $0x2c4] ss:$16 sps:$4 sm:$0xff]  }
 0x194   :  { %1429 = vmatprep.subr.bf16.mxu1 %v3583_v11  ;;  %v3668_v11 = vld [vmem:[#allocation7 + $0x2c0] ss:$16 sps:$4 sm:$0xff]  }
 0x196   :  { %1389 = vmatpush2.bf16.msra.mxu0 %v3578_v12  ;;  %v3676_v12 = vld [vmem:[#allocation7 + $0x2a4] ss:$16 sps:$4 sm:$0xff]  }
 0x197   :  { %1430 = vmatpush2.bf16.msra.mxu1 %v3581_v15  ;;  %1390 = vmatprep.subr.bf16.mxu0 %v3586_v16  ;;  %v3674_v15 = vld [vmem:[#allocation7 + $0x2a0] ss:$16 sps:$4 sm:$0xff]   ;;  %v3682_v16 = vld [vmem:[#allocation7 + $0x284] ss:$16 sps:$4 sm:$0xff]  }
 0x198   :  { %1431 = vmatprep.subr.bf16.mxu1 %v3589_v17  ;;  %v3680_v17 = vld [vmem:[#allocation7 + $0x280] ss:$16 sps:$4 sm:$0xff]  }
 0x19a   :  { %1391 = vmatpush2.bf16.msra.mxu0 %v3584_v18  ;;  %v3688_v18 = vld [vmem:[#allocation7 + $0x264] ss:$16 sps:$4 sm:$0xff]  }
 0x19b   :  { %1432 = vmatpush2.bf16.msra.mxu1 %v3587_v19  ;;  %1392 = vmatprep.subr.bf16.mxu0 %v3592_v20  ;;  %v3686_v19 = vld [vmem:[#allocation7 + $0x260] ss:$16 sps:$4 sm:$0xff]   ;;  %v3694_v20 = vld [vmem:[#allocation7 + $0x244] ss:$16 sps:$4 sm:$0xff]  }
 0x19c   :  { %1433 = vmatprep.subr.bf16.mxu1 %v3595_v21  ;;  %v3692_v21 = vld [vmem:[#allocation7 + $0x240] ss:$16 sps:$4 sm:$0xff]  }
 0x19e   :  { %1393 = vmatpush2.bf16.msra.mxu0 %v3590_v22  ;;  %v3700_v22 = vld [vmem:[#allocation7 + $0x224] ss:$16 sps:$4 sm:$0xff]  }
 0x19f   :  { %1434 = vmatpush2.bf16.msra.mxu1 %v3593_v7  ;;  %1394 = vmatprep.subr.bf16.mxu0 %v3598_v23  ;;  %v3698_v7 = vld [vmem:[#allocation7 + $0x220] ss:$16 sps:$4 sm:$0xff]   ;;  %v3706_v23 = vld [vmem:[#allocation7 + $0x204] ss:$16 sps:$4 sm:$0xff]  }
 0x1a0   :  { %1435 = vmatprep.subr.bf16.mxu1 %v3601_v8  ;;  %v3704_v8 = vld [vmem:[#allocation7 + $0x200] ss:$16 sps:$4 sm:$0xff]  }
 0x1a2   :  { %1395 = vmatpush2.bf16.msra.mxu0 %v3596_v24  ;;  %v3712_v24 = vld [vmem:[#allocation7 + $0x3e4] ss:$16 sps:$4 sm:$0xff]  }
 0x1a3   :  { %1436 = vmatpush2.bf16.msra.mxu1 %v3599_v25  ;;  %1396 = vmatprep.subr.bf16.mxu0 %v3604_v26  ;;  %v3710_v25 = vld [vmem:[#allocation7 + $0x3e0] ss:$16 sps:$4 sm:$0xff]   ;;  %v3718_v26 = vld [vmem:[#allocation7 + $0x3c4] ss:$16 sps:$4 sm:$0xff]  }
 0x1a4   :  { %1437 = vmatprep.subr.bf16.mxu1 %v3607_v27  ;;  %v3716_v27 = vld [vmem:[#allocation7 + $0x3c0] ss:$16 sps:$4 sm:$0xff]  }
 0x1a6   :  { %1397 = vmatpush2.bf16.msra.mxu0 %v3602_v28  ;;  %v3724_v28 = vld [vmem:[#allocation7 + $0x3a4] ss:$16 sps:$4 sm:$0xff]  }
 0x1a7   :  { %1438 = vmatpush2.bf16.msra.mxu1 %v3605_v13  ;;  %1398 = vmatprep.subr.bf16.mxu0 %v3610_v29  ;;  %v3722_v13 = vld [vmem:[#allocation7 + $0x3a0] ss:$16 sps:$4 sm:$0xff]   ;;  %v3730_v29 = vld [vmem:[#allocation7 + $0x384] ss:$16 sps:$4 sm:$0xff]  }
 0x1a8   :  { %1439 = vmatprep.subr.bf16.mxu1 %v3613_v31  ;;  %v3728_v31 = vld [vmem:[#allocation7 + $0x380] ss:$16 sps:$4 sm:$0xff]  }
 0x1aa   :  { %1399 = vmatpush2.bf16.msra.mxu0 %v3608_v32  ;;  %v3736_v32 = vld [vmem:[#allocation7 + $0x364] ss:$16 sps:$4 sm:$0xff]  }
 0x1ab   :  { %1440 = vmatpush2.bf16.msra.mxu1 %v3611_v33  ;;  %2350 = vmatprep.subr.bf16.mxu0 %v3616_v34  ;;  %v3734_v33 = vld [vmem:[#allocation7 + $0x360] ss:$16 sps:$4 sm:$0xff]   ;;  %v3742_v34 = vld [vmem:[#allocation7 + $0x344] ss:$16 sps:$4 sm:$0xff]  }
 0x1ac   :  { %2391 = vmatprep.subr.bf16.mxu1 %v3664_v5 }
 0x1ad   :  { %1401 = vmatmul.mubr.bf16.vlgmr.msra.gmra.mxu0 %v4112_v30  ;;  %v3626_v30 = vld [vmem:[#allocation7 + $0x60] ss:$16 sps:$4 sm:$0xff]  }
 0x1ae   :  { %1442 = vmatmul.mubr.bf16.vlgmr.msra.gmra.mxu1 %v4114_v14  ;;  %2351 = vmatpush1.bf16.msra.mxu0 %v3614_v35  ;;  %v3631_v14 = vld [vmem:[#allocation7 + $0x44] ss:$16 sps:$4 sm:$0xff]   ;;  %v3740_v35 = vld [vmem:[#allocation7 + $0x340] ss:$16 sps:$4 sm:$0xff]  }
 0x1af   :  { %2352 = vmatprep.subr.bf16.mxu0 %v3619_v36  ;;  %2392 = vmatpush1.bf16.msra.mxu1 %v3662_v6  ;;  %v3748_v36 = vld [vmem:[#allocation7 + $0x324] ss:$16 sps:$4 sm:$0xff]  }
 0x1b0   :  { %2393 = vmatprep.subr.bf16.mxu1 %v3670_v10 }
 0x1b2   :  { %2353 = vmatpush1.bf16.msra.mxu0 %v3617_v37  ;;  %v3746_v37 = vld [vmem:[#allocation7 + $0x320] ss:$16 sps:$4 sm:$0xff]  }
 0x1b3   :  { %2354 = vmatprep.subr.bf16.mxu0 %v3622_v38  ;;  %2394 = vmatpush1.bf16.msra.mxu1 %v3668_v11  ;;  %v3752_v38 = vld [vmem:[#allocation7 + $0x300] ss:$16 sps:$4 sm:$0xff]  }
 0x1b4   :  { %2395 = vmatprep.subr.bf16.mxu1 %v3676_v12 }
 0x1b6   :  { %2355 = vmatpush1.bf16.msra.mxu0 %v3620_v39  ;;  %v3754_v39 = vld [vmem:[#allocation7 + $0x304] ss:$16 sps:$4 sm:$0xff]  }
 0x1b7   :  { %2356 = vmatprep.subr.bf16.mxu0 %v3625_v40  ;;  %2396 = vmatpush1.bf16.msra.mxu1 %v3674_v15 }
 0x1b8   :  { %2397 = vmatprep.subr.bf16.mxu1 %v3682_v16 }
 0x1ba   :  { %2357 = vmatpush1.bf16.msra.mxu0 %v3623_v41 }
 0x1bb   :  { %2358 = vmatprep.subr.bf16.mxu0 %v3628_v42  ;;  %2398 = vmatpush1.bf16.msra.mxu1 %v3680_v17  ;;  %v3760_v42 = vld [vmem:[#allocation7 + $0x2ec] ss:$16 sps:$4 sm:$0xff]  }
 0x1bc   :  { %2399 = vmatprep.subr.bf16.mxu1 %v3688_v18 }
 0x1be   :  { %2359 = vmatpush1.bf16.msra.mxu0 %v3626_v30 }
 0x1bf   :  { %2360 = vmatprep.subr.bf16.mxu0 %v3631_v14  ;;  %2400 = vmatpush1.bf16.msra.mxu1 %v3686_v19 }
 0x1c0   :  { %2401 = vmatprep.subr.bf16.mxu1 %v3694_v20 }
 0x1c2   :  { %2361 = vmatpush1.bf16.msra.mxu0 %v3629_v43 }
 0x1c3   :  { %2362 = vmatprep.subr.bf16.mxu0 %v3634_v44  ;;  %2402 = vmatpush1.bf16.msra.mxu1 %v3692_v21 }
 0x1c4   :  { %2403 = vmatprep.subr.bf16.mxu1 %v3700_v22 }
 0x1c6   :  { %2363 = vmatpush1.bf16.msra.mxu0 %v3632_v45 }
 0x1c7   :  { %2364 = vmatprep.subr.bf16.mxu0 %v3637_v46  ;;  %2404 = vmatpush1.bf16.msra.mxu1 %v3698_v7 }
 0x1c8   :  { %2405 = vmatprep.subr.bf16.mxu1 %v3706_v23 }
 0x1ca   :  { %2365 = vmatpush1.bf16.msra.mxu0 %v3635_v47 }
 0x1cb   :  { %2366 = vmatprep.subr.bf16.mxu0 %v3640_v48  ;;  %2406 = vmatpush1.bf16.msra.mxu1 %v3704_v8 }
 0x1cc   :  { %2407 = vmatprep.subr.bf16.mxu1 %v3712_v24 }
 0x1ce   :  { %2367 = vmatpush2.bf16.msra.mxu0 %v3638_v49 }
 0x1cf   :  { %2368 = vmatprep.subr.bf16.mxu0 %v3643_v52  ;;  %2408 = vmatpush2.bf16.msra.mxu1 %v3710_v25 }
 0x1d0   :  { %2409 = vmatprep.subr.bf16.mxu1 %v3718_v26  ;;  %v4121_v26 = vsub.s32 2, %v4088_v50 }
 0x1d2   :  { %2369 = vmatpush2.bf16.msra.mxu0 %v3641_v53 }
 0x1d3   :  { %2370 = vmatprep.subr.bf16.mxu0 %v3646_v55  ;;  %2410 = vmatpush2.bf16.msra.mxu1 %v3716_v27  ;;  %v4124_v27 = vsub.s32 3, %v4088_v50 }
 0x1d4   :  { %2411 = vmatprep.subr.bf16.mxu1 %v3724_v28 }
 0x1d6   :  { %2371 = vmatpush2.bf16.msra.mxu0 %v3644_v57 }
 0x1d7   :  { %2372 = vmatprep.subr.bf16.mxu0 %v3649_v58  ;;  %2412 = vmatpush2.bf16.msra.mxu1 %v3722_v13 }
 0x1d8   :  { %2413 = vmatprep.subr.bf16.mxu1 %v3730_v29 }
 0x1da   :  { %2373 = vmatpush2.bf16.msra.mxu0 %v3647_v60 }
 0x1db   :  { %2374 = vmatprep.subr.bf16.mxu0 %v3652_v61  ;;  %2414 = vmatpush2.bf16.msra.mxu1 %v3728_v31 }
 0x1dc   :  { %2415 = vmatprep.subr.bf16.mxu1 %v3736_v32  ;;  %v1549_v32 = vrot.slane %v4090_v51, %v4124_v27 }
 0x1de   :  { %2375 = vmatpush2.bf16.msra.mxu0 %v3650_v62 }
 0x1df   :  { %2376 = vmatprep.subr.bf16.mxu0 %v3655_v63  ;;  %2416 = vmatpush2.bf16.msra.mxu1 %v3734_v33 }
 0x1e0   :  { %2417 = vmatprep.subr.bf16.mxu1 %v3742_v34 }
 0x1e2   :  { %2377 = vmatpush2.bf16.msra.mxu0 %v3653_v0 }
 0x1e3   :  { %2378 = vmatprep.subr.bf16.mxu0 %v3658_v2  ;;  %2418 = vmatpush2.bf16.msra.mxu1 %v3740_v35 }
 0x1e4   :  { %2419 = vmatprep.subr.bf16.mxu1 %v3748_v36  ;;  %v1553_v36 = vrot.slane %v4096_v56, %v4124_v27 }
 0x1e6   :  { %2379 = vmatpush2.bf16.msra.mxu0 %v3656_v1 }
 0x1e7   :  { %2380 = vmatprep.subr.bf16.mxu0 %v3661_v3  ;;  %2420 = vmatpush2.bf16.msra.mxu1 %v3746_v37 }
 0x1e8   :  { %2421 = vmatprep.subr.bf16.mxu1 %v3754_v39 }
 0x1ea   :  { %2381 = vmatpush2.bf16.msra.mxu0 %v3659_v4 }
 0x1eb   :  { %2432 = vmatprep.subr.bf16.mxu0 %v3667_v9  ;;  %2422 = vmatpush2.bf16.msra.mxu1 %v3752_v38 }
 0x1ec   :  { %2473 = vmatprep.subr.bf16.mxu1 %v3760_v42 }
 0x22d   :  { %v1320_v40 = vpop.f32.mrf.mxu0 }
 0x22e   :  { %v1361_v41 = vpop.f32.mrf.mxu1 }
 0x22f   :  { %v1362_v30 = vadd.f32 %v1361_v41, %v1320_v40  ;;  %v1322_v14 = vpop.f32.mrf.mxu0 }
 0x230   :  { %v1363_v43 = vpop.f32.mrf.mxu1 }
 0x231   :  { %v1450_v44 = vrot.slane %v1362_v30, 4  ;;  %v1364_v45 = vadd.f32 %v1363_v43, %v1322_v14  ;;  %v1324_v46 = vpop.f32.mrf.mxu0 }
 0x232   :  { %v1365_v47 = vpop.f32.mrf.mxu1 }
 0x233   :  { %v1451_v48 = vadd.f32 %v1450_v44, %v1362_v30  ;;  %v1456_v49 = vrot.slane %v1364_v45, 4  ;;  %v1325_v52 = vpop.f32.mrf.mxu0  ;;  %v3665_v44 = vld [vmem:[#allocation7 + $0xe8] ss:$16 sps:$4 sm:$0xff]  }
 0x234   :  { %v1366_v53 = vpop.f32.mrf.mxu1 }
 0x235   :  { %v1452_v55 = vrot.slane %v1451_v48, 2  ;;  %v1457_v57 = vadd.f32 %v1456_v49, %v1364_v45 }
 0x237   :  { %v1453_v58 = vadd.f32 %v1452_v55, %v1451_v48  ;;  %v1458_v60 = vrot.slane %v1457_v57, 2  ;;  %v3673_v48 = vld [vmem:[#allocation7 + $0xcc] ss:$16 sps:$4 sm:$0xff]  }
 0x239   :  { %v1454_v61 = vrot.slane %v1453_v58, 1  ;;  %v1459_v62 = vadd.f32 %v1458_v60, %v1457_v57  ;;  %v3671_v57 = vld [vmem:[#allocation7 + $0xc8] ss:$16 sps:$4 sm:$0xff]  }
 0x23b   :  { %v1455_v63 = vadd.f32 %v1454_v61, %v1453_v58  ;;  %v1460_v0 = vrot.slane %v1459_v62, 1 }
 0x23d   :  { %v1474_v1 = vmul.f32 0.125, %v1455_v63  ;;  %v1461_v2 = vadd.f32 %v1460_v0, %v1459_v62  ;;  %v3679_v62 = vld [vmem:[#allocation7 + $0xac] ss:$16 sps:$4 sm:$0xff]  }
 0x23f   :  { %v1478_v3 = vsub.f32 %v1362_v30, %v1474_v1  ;;  %v1475_v4 = vmul.f32 0.125, %v1461_v2  ;;  %v3677_v2 = vld [vmem:[#allocation7 + $0xa8] ss:$16 sps:$4 sm:$0xff]  }
 0x241   :  { %v1482_v5 = vmul.f32 %v1478_v3, %v1478_v3  ;;  %v1479_v6 = vsub.f32 %v1364_v45, %v1475_v4 }
 0x243   :  { %v1486_v9 = vrot.slane %v1482_v5, 4  ;;  %v1483_v10 = vmul.f32 %v1479_v6, %v1479_v6 }
 0x245   :  { %v1487_v11 = vadd.f32 %v1486_v9, %v1482_v5  ;;  %v1492_v12 = vrot.slane %v1483_v10, 4  ;;  %v3685_v5 = vld [vmem:[#allocation7 + $0x8c] ss:$16 sps:$4 sm:$0xff]  }
 0x247   :  { %v1488_v15 = vrot.slane %v1487_v11, 2  ;;  %v1493_v16 = vadd.f32 %v1492_v12, %v1483_v10  ;;  %v3683_v10 = vld [vmem:[#allocation7 + $0x88] ss:$16 sps:$4 sm:$0xff]  }
 0x249   :  { %v1489_v17 = vadd.f32 %v1488_v15, %v1487_v11  ;;  %v1494_v18 = vrot.slane %v1493_v16, 2  ;;  %v3691_v15 = vld [vmem:[#allocation7 + $0x6c] ss:$16 sps:$4 sm:$0xff]  }
 0x24b   :  { %v1490_v19 = vrot.slane %v1489_v17, 1  ;;  %v1495_v20 = vadd.f32 %v1494_v18, %v1493_v16  ;;  %v3689_v18 = vld [vmem:[#allocation7 + $0x68] ss:$16 sps:$4 sm:$0xff]  }
 0x24d   :  { %v1491_v21 = vadd.f32 %v1490_v19, %v1489_v17  ;;  %v1496_v22 = vrot.slane %v1495_v20, 1 }
 0x24f   :  { %v1510_v7 = vmul.f32 0.125, %v1491_v21  ;;  %v1497_v23 = vadd.f32 %v1496_v22, %v1495_v20  ;;  %v3697_v21 = vld [vmem:[#allocation7 + $0x4c] ss:$16 sps:$4 sm:$0xff]  }
 0x251   :  { %v1514_v8 = vadd.f32 1e-05, %v1510_v7  ;;  %v1511_v24 = vmul.f32 0.125, %v1497_v23  ;;  %v3695_v23 = vld [vmem:[#allocation7 + $0x48] ss:$16 sps:$4 sm:$0xff]  }
 0x253   :  { %3846 = vrsqrt.f32 %v1514_v8  ;;  %v1515_v25 = vadd.f32 1e-05, %v1511_v24 }
 0x255   :  { %3848 = vrsqrt.f32 %v1515_v25  ;;  %v3703_v25 = vld [vmem:[#allocation7 + $0x2c] ss:$16 sps:$4 sm:$0xff]  }
 0x260   :  { %v3847_v28 = vpop.eup %3846 }
 0x261   :  { %v1522_v13 = vmul.f32 %v3847_v28, %v4090_v51 }
 0x262   :  { %v3849_v29 = vpop.eup %3848 }
 0x263   :  { %v1529_v31 = vrot.slane %v1522_v13, %v4121_v26  ;;  %v1523_v33 = vmul.f32 %v3849_v29, %v4096_v56  ;;  %v3701_v29 = vld [vmem:[#allocation7 + $0x28] ss:$16 sps:$4 sm:$0xff]  }
 0x265   :  { %v1542_v34 = vmul.f32 %v1529_v31, %v1478_v3  ;;  %v1533_v35 = vrot.slane %v1523_v33, %v4121_v26  ;;  %v3709_v33 = vld [vmem:[#allocation7 + $0xc] ss:$16 sps:$4 sm:$0xff]  }
 0x267   :  { %v1562_v37 = vadd.f32 %v1549_v32, %v1542_v34  ;;  %v1543_v38 = vmul.f32 %v1533_v35, %v1479_v6 }
 0x269   :  { %v1563_v39 = vadd.f32 %v1553_v36, %v1543_v38  ;;  %vm1566_vm4 = vcmp.gt.f32.partialorder %v1562_v37, 0.0  ;;  %v1570_v40 = vmul.f32 0.01, %v1562_v37  ;;  %v3707_v36 = vld [vmem:[#allocation7 + $0x8] ss:$16 sps:$4 sm:$0xff]  }
 0x26b   :  { %vm1567_vm5 = vcmp.gt.f32.partialorder %v1563_v39, 0.0  ;;  %v1571_v41 = vmul.f32 0.01, %v1563_v39  ;;  %v1574_v42 = vsel %vm1566_vm4, %v1562_v37, %v1570_v40 }
 0x26c   :  { %v4134_v47 = vpack.c.bf16 %v1574_v42, %v1574_v42  ;;  %v3713_v42 = vld [vmem:[#allocation7 + $0x1e8] ss:$16 sps:$4 sm:$0xff]  }
 0x26d   :  { %v1402_v30 = vpop.f32.mrf.mxu0  ;;  %v1575_v14 = vsel %vm1567_vm5, %v1563_v39, %v1571_v41  ;;  %v3715_v39 = vld [vmem:[#allocation7 + $0x1ec] ss:$16 sps:$4 sm:$0xff]  }
 0x26e   :  { %v1443_v43 = vpop.f32.mrf.mxu1  ;;  %v1579_v51 = vpack.c.bf16 %v1575_v14, %v1575_v14 }
 0x26f   :  { %v1444_v45 = vadd.f32 %v1443_v43, %v1402_v30  ;;  %v1404_v46 = vpop.f32.mrf.mxu0  ;;  %v3721_v43 = vld [vmem:[#allocation7 + $0x1cc] ss:$16 sps:$4 sm:$0xff]  }
 0x270   :  { %v1445_v49 = vpop.f32.mrf.mxu1  ;;  %2382 = vmatprep.mubr.bf16.mxu0 %v1579_v51 }
 0x271   :  { %v1462_v56 = vrot.slane %v1444_v45, 4  ;;  %v1446_v52 = vadd.f32 %v1445_v49, %v1404_v46  ;;  %v1406_v53 = vpop.f32.mrf.mxu0  ;;  %2383 = vmatmul.mubr.bf16.vlgmr.msra.gmra.mxu0 %v4134_v47  ;;  %v3725_v49 = vld [vmem:[#allocation7 + $0x1a8] ss:$16 sps:$4 sm:$0xff]  }
 0x272   :  { %v1447_v55 = vpop.f32.mrf.mxu1  ;;  %2433 = vmatpush1.bf16.msra.mxu0 %v3665_v44  ;;  %2464 = vmatprep.mubr.bf16.mxu0 %v1579_v51  ;;  %v3739_v53 = vld [vmem:[#allocation7 + $0x16c] ss:$16 sps:$4 sm:$0xff]  }
 0x273   :  { %v1463_v58 = vadd.f32 %v1462_v56, %v1444_v45  ;;  %v1468_v60 = vrot.slane %v1446_v52, 4  ;;  %v1407_v61 = vpop.f32.mrf.mxu0  ;;  %2434 = vmatprep.subr.bf16.mxu0 %v3673_v48  ;;  %v3727_v48 = vld [vmem:[#allocation7 + $0x1ac] ss:$16 sps:$4 sm:$0xff]   ;;  %v3737_v55 = vld [vmem:[#allocation7 + $0x168] ss:$16 sps:$4 sm:$0xff]  }
 0x274   :  { %v1448_v63 = vpop.f32.mrf.mxu1  ;;  %v3733_v56 = vld [vmem:[#allocation7 + $0x18c] ss:$16 sps:$4 sm:$0xff]  }
 0x275   :  { %v1464_v0 = vrot.slane %v1463_v58, 2  ;;  %v1469_v1 = vadd.f32 %v1468_v60, %v1446_v52 }
 0x276   :  { %2435 = vmatpush1.bf16.msra.mxu0 %v3671_v57  ;;  %v3745_v57 = vld [vmem:[#allocation7 + $0x14c] ss:$16 sps:$4 sm:$0xff]  }
 0x277   :  { %v1465_v3 = vadd.f32 %v1464_v0, %v1463_v58  ;;  %v1470_v4 = vrot.slane %v1469_v1, 2  ;;  %2436 = vmatprep.subr.bf16.mxu0 %v3679_v62  ;;  %v3743_v62 = vld [vmem:[#allocation7 + $0x148] ss:$16 sps:$4 sm:$0xff]   ;;  %v1557_v0 = vrot.slane %v4094_v54, %v4124_v27 }
 0x279   :  { %v1466_v6 = vrot.slane %v1465_v3, 1  ;;  %v1471_v9 = vadd.f32 %v1470_v4, %v1469_v1 }
 0x27a   :  { %2437 = vmatpush1.bf16.msra.mxu0 %v3677_v2  ;;  %v3751_v2 = vld [vmem:[#allocation7 + $0x12c] ss:$16 sps:$4 sm:$0xff]  }
 0x27b   :  { %v1467_v11 = vadd.f32 %v1466_v6, %v1465_v3  ;;  %v1472_v12 = vrot.slane %v1471_v9, 1  ;;  %2438 = vmatprep.subr.bf16.mxu0 %v3685_v5  ;;  %v1561_v5 = vrot.slane %v4099_v59, %v4124_v27  ;;  %v3749_v6 = vld [vmem:[#allocation7 + $0x128] ss:$16 sps:$4 sm:$0xff]  }
 0x27d   :  { %v1476_v16 = vmul.f32 0.125, %v1467_v11  ;;  %v1473_v17 = vadd.f32 %v1472_v12, %v1471_v9  ;;  %v3757_v11 = vld [vmem:[#allocation7 + $0x10c] ss:$16 sps:$4 sm:$0xff]  }
 0x27e   :  { %2439 = vmatpush1.bf16.msra.mxu0 %v3683_v10 }
 0x27f   :  { %v4137_v19 = vsub.f32 %v1444_v45, %v1476_v16  ;;  %v1477_v20 = vmul.f32 0.125, %v1473_v17  ;;  %2440 = vmatprep.subr.bf16.mxu0 %v3691_v15  ;;  %v3719_v45 = vld [vmem:[#allocation7 + $0x1c8] ss:$16 sps:$4 sm:$0xff]  }
 0x280   :  { %v3755_v15 = vld [vmem:[#allocation7 + $0x108] ss:$16 sps:$4 sm:$0xff]  }
 0x281   :  { %v1484_v22 = vmul.f32 %v4137_v19, %v4137_v19  ;;  %v4141_v7 = vsub.f32 %v1446_v52, %v1477_v20  ;;  %v3731_v52 = vld [vmem:[#allocation7 + $0x188] ss:$16 sps:$4 sm:$0xff]  }
 0x282   :  { %2441 = vmatpush1.bf16.msra.mxu0 %v3689_v18  ;;  %v3761_v20 = vld [vmem:[#allocation7 + $0x2c8] ss:$16 sps:$4 sm:$0xff]  }
 0x283   :  { %v1498_v8 = vrot.slane %v1484_v22, 4  ;;  %v1485_v24 = vmul.f32 %v4141_v7, %v4141_v7  ;;  %2442 = vmatprep.subr.bf16.mxu0 %v3697_v21  ;;  %v3766_v21 = vld [vmem:[#allocation7 + $0x2ac] ss:$16 sps:$4 sm:$0xff]  }
 0x285   :  { %v1499_v28 = vadd.f32 %v1498_v8, %v1484_v22  ;;  %v1504_v13 = vrot.slane %v1485_v24, 4  ;;  %v3764_v22 = vld [vmem:[#allocation7 + $0x2a8] ss:$16 sps:$4 sm:$0xff]   ;;  %v3772_v8 = vld [vmem:[#allocation7 + $0x26c] ss:$16 sps:$4 sm:$0xff]  }
 0x286   :  { %2443 = vmatpush1.bf16.msra.mxu0 %v3695_v23  ;;  %v3767_v23 = vld [vmem:[#allocation7 + $0x288] ss:$16 sps:$4 sm:$0xff]  }
 0x287   :  { %v1500_v31 = vrot.slane %v1499_v28, 2  ;;  %v1505_v32 = vadd.f32 %v1504_v13, %v1485_v24  ;;  %2444 = vmatprep.subr.bf16.mxu0 %v3703_v25  ;;  %v3770_v24 = vld [vmem:[#allocation7 + $0x268] ss:$16 sps:$4 sm:$0xff]   ;;  %v3775_v25 = vld [vmem:[#allocation7 + $0x24c] ss:$16 sps:$4 sm:$0xff]  }
 0x288   :  { %v3776_v13 = vld [vmem:[#allocation7 + $0x228] ss:$16 sps:$4 sm:$0xff]  }
 0x289   :  { %v1501_v34 = vadd.f32 %v1500_v31, %v1499_v28  ;;  %v1506_v35 = vrot.slane %v1505_v32, 2  ;;  %v3773_v28 = vld [vmem:[#allocation7 + $0x248] ss:$16 sps:$4 sm:$0xff]  }
 0x28a   :  { %2445 = vmatpush1.bf16.msra.mxu0 %v3701_v29  ;;  %v3781_v29 = vld [vmem:[#allocation7 + $0x20c] ss:$16 sps:$4 sm:$0xff]   ;;  %v3779_v31 = vld [vmem:[#allocation7 + $0x208] ss:$16 sps:$4 sm:$0xff]  }
 0x28b   :  { %v1502_v37 = vrot.slane %v1501_v34, 1  ;;  %v1507_v38 = vadd.f32 %v1506_v35, %v1505_v32  ;;  %2446 = vmatprep.subr.bf16.mxu0 %v3709_v33  ;;  %v3784_v32 = vld [vmem:[#allocation7 + $0x3ec] ss:$16 sps:$4 sm:$0xff]   ;;  %v3782_v33 = vld [vmem:[#allocation7 + $0x3e8] ss:$16 sps:$4 sm:$0xff]  }
 0x28c   :  { %v3785_v35 = vld [vmem:[#allocation7 + $0x3c8] ss:$16 sps:$4 sm:$0xff]  }
 0x28d   :  { %v1503_v40 = vadd.f32 %v1502_v37, %v1501_v34  ;;  %v1508_v41 = vrot.slane %v1507_v38, 1  ;;  %v3787_v34 = vld [vmem:[#allocation7 + $0x3cc] ss:$16 sps:$4 sm:$0xff]   ;;  %v3788_v37 = vld [vmem:[#allocation7 + $0x3a8] ss:$16 sps:$4 sm:$0xff]  }
 0x28e   :  { %2447 = vmatpush1.bf16.msra.mxu0 %v3707_v36  ;;  %v3790_v36 = vld [vmem:[#allocation7 + $0x3ac] ss:$16 sps:$4 sm:$0xff]  }
 0x28f   :  { %v1512_v30 = vmul.f32 0.125, %v1503_v40  ;;  %v1509_v14 = vadd.f32 %v1508_v41, %v1507_v38  ;;  %2448 = vmatprep.subr.bf16.mxu0 %v3715_v39  ;;  %v3793_v38 = vld [vmem:[#allocation7 + $0x38c] ss:$16 sps:$4 sm:$0xff]   ;;  %v3791_v39 = vld [vmem:[#allocation7 + $0x388] ss:$16 sps:$4 sm:$0xff]  }
 0x290   :  { %v3796_v40 = vld [vmem:[#allocation7 + $0x36c] ss:$16 sps:$4 sm:$0xff]   ;;  %v3794_v41 = vld [vmem:[#allocation7 + $0x368] ss:$16 sps:$4 sm:$0xff]  }
 0x291   :  { %v1516_v51 = vadd.f32 1e-05, %v1512_v30  ;;  %v1513_v44 = vmul.f32 0.125, %v1509_v14  ;;  %v3797_v30 = vld [vmem:[#allocation7 + $0x348] ss:$16 sps:$4 sm:$0xff]  }
 0x292   :  { %2449 = vmatpush2.bf16.msra.mxu0 %v3713_v42  ;;  %v3799_v42 = vld [vmem:[#allocation7 + $0x34c] ss:$16 sps:$4 sm:$0xff]  }
 0x293   :  { %3850 = vrsqrt.f32 %v1516_v51  ;;  %v1517_v46 = vadd.f32 1e-05, %v1513_v44  ;;  %2450 = vmatprep.subr.bf16.mxu0 %v3721_v43  ;;  %v3802_v14 = vld [vmem:[#allocation7 + $0x32c] ss:$16 sps:$4 sm:$0xff]   ;;  %v3800_v43 = vld [vmem:[#allocation7 + $0x328] ss:$16 sps:$4 sm:$0xff]  }
 0x294   :  { %v3805_v51 = vld [vmem:[#allocation7 + $0x30c] ss:$16 sps:$4 sm:$0xff]   ;;  %v3803_v44 = vld [vmem:[#allocation7 + $0x308] ss:$16 sps:$4 sm:$0xff]  }
 0x295   :  { %3852 = vrsqrt.f32 %v1517_v46  ;;  %v3807_v46 = vld [vmem:[#allocation9 + $0x38] sm:$0xff]  }
 0x296   :  { %2451 = vmatpush2.bf16.msra.mxu0 %v3719_v45  ;;  %v3806_v45 = vld [vmem:[#allocation9 + $0x78] sm:$0xff]  }
 0x297   :  { %2452 = vmatprep.subr.bf16.mxu0 %v3727_v48  ;;  %v3808_v48 = vld [vmem:[#allocation9 + $0x70] sm:$0xff]  }
 0x29a   :  { %2453 = vmatpush2.bf16.msra.mxu0 %v3725_v49  ;;  %v3809_v49 = vld [vmem:[#allocation9 + $0x30] sm:$0xff]  }
 0x29b   :  { %2454 = vmatprep.subr.bf16.mxu0 %v3733_v56  ;;  %v3810_v56 = vld [vmem:[#allocation9 + $0x68] sm:$0xff]  }
 0x29e   :  { %2455 = vmatpush2.bf16.msra.mxu0 %v3731_v52  ;;  %v3811_v52 = vld [vmem:[#allocation9 + $0x28] sm:$0xff]  }
 0x29f   :  { %2456 = vmatprep.subr.bf16.mxu0 %v3739_v53  ;;  %v3812_v53 = vld [vmem:[#allocation9 + $0x60] sm:$0xff]  }
 0x2a0   :  { %v3851_v58 = vpop.eup %3850 }
 0x2a1   :  { %v1524_v60 = vmul.f32 %v3851_v58, %v4094_v54  ;;  %v3815_v58 = vld [vmem:[#allocation9 + $0x18] sm:$0xff]  }
 0x2a2   :  { %v3853_v61 = vpop.eup %3852  ;;  %2457 = vmatpush2.bf16.msra.mxu0 %v3737_v55  ;;  %v3813_v55 = vld [vmem:[#allocation9 + $0x20] sm:$0xff]  }
 0x2a3   :  { %v1537_v63 = vrot.slane %v1524_v60, %v4121_v26  ;;  %v1525_v1 = vmul.f32 %v3853_v61, %v4099_v59  ;;  %2458 = vmatprep.subr.bf16.mxu0 %v3745_v57  ;;  %v3758_v59 = vld [vmem:[#allocation7 + $0x2e8] ss:$16 sps:$4 sm:$0xff]   ;;  %v3816_v60 = vld [vmem:[#allocation9 + $0x50] sm:$0xff]  }
 0x2a4   :  { %v3814_v57 = vld [vmem:[#allocation9 + $0x58] sm:$0xff]   ;;  %v3817_v61 = vld [vmem:[#allocation9 + $0x10] sm:$0xff]  }
 0x2a5   :  { %v1544_v3 = vmul.f32 %v1537_v63, %v4137_v19  ;;  %v1541_v4 = vrot.slane %v1525_v1, %v4121_v26  ;;  %v3763_v19 = vld [vmem:[#allocation7 + $0x2cc] ss:$16 sps:$4 sm:$0xff]   ;;  %v3821_v1 = vld [vmem:[#allocation9] sm:$0xff]  }
 0x2a6   :  { %2459 = vmatpush2.bf16.msra.mxu0 %v3743_v62  ;;  %v3818_v62 = vld [vmem:[#allocation9 + $0x48] sm:$0xff]  }
 0x2a7   :  { %v1564_v9 = vadd.f32 %v1557_v0, %v1544_v3  ;;  %v1545_v10 = vmul.f32 %v1541_v4, %v4141_v7  ;;  %2460 = vmatprep.subr.bf16.mxu0 %v3751_v2  ;;  %v3769_v7 = vld [vmem:[#allocation7 + $0x28c] ss:$16 sps:$4 sm:$0xff]   ;;  %v3820_v0 = vld [vmem:[#allocation9 + $0x40] sm:$0xff]  }
 0x2a8   :  { %v3819_v63 = vld [vmem:[#allocation9 + $0x8] sm:$0xff]  }
 0x2a9   :  { %v1565_v12 = vadd.f32 %v1561_v5, %v1545_v10  ;;  %vm1568_vm6 = vcmp.gt.f32.partialorder %v1564_v9, 0.0  ;;  %v1572_v54 = vmul.f32 0.01, %v1564_v9  ;;  %v3824_v10 = vld [vmem:[#allocation9 + $0xf0] sm:$0xff]  }
 0x2aa   :  { %2461 = vmatpush2.bf16.msra.mxu0 %v3749_v6  ;;  %v3822_v6 = vld [vmem:[#allocation9 + $0xf8] sm:$0xff]  }
 0x2ab   :  { %2462 = vmatprep.subr.bf16.mxu0 %v3757_v11  ;;  %vm1569_vm7 = vcmp.gt.f32.partialorder %v1565_v12, 0.0  ;;  %v1573_v16 = vmul.f32 0.01, %v1565_v12  ;;  %v1576_v17 = vsel %vm1568_vm6, %v1564_v9, %v1572_v54  ;;  %v3823_v9 = vld [vmem:[#allocation9 + $0xb8] sm:$0xff]   ;;  %v3825_v11 = vld [vmem:[#allocation9 + $0xb0] sm:$0xff]   ;;  %v3827_v54 = vld [vmem:[#allocation9 + $0xa8] sm:$0xff]  }
 0x2ac   :  { %v4155_v27 = vpack.c.bf16 %v1576_v17, %v1576_v17  ;;  %v3830_v17 = vld [vmem:[#allocation9 + $0xd8] sm:$0xff]  }
 0x2ad   :  { %v1577_v26 = vsel %vm1569_vm7, %v1565_v12, %v1573_v16  ;;  %v3826_v12 = vld [vmem:[#allocation9 + $0xe8] sm:$0xff]   ;;  %v3829_v16 = vld [vmem:[#allocation9 + $0xa0] sm:$0xff]  }
 0x2ae   :  { %2463 = vmatpush2.bf16.msra.mxu0 %v3755_v15  ;;  %v1581_v18 = vpack.c.bf16 %v1577_v26, %v1577_v26  ;;  %v3828_v15 = vld [vmem:[#allocation9 + $0xe0] sm:$0xff]   ;;  %v3831_v26 = vld [vmem:[#allocation9 + $0x98] sm:$0xff]  }
 0x2af   :  { %3319 = vmatprep.subr.bf16.mxu0 %v3806_v45 }
 0x2b0   :  { %2423 = vmatprep.mubr.bf16.mxu1 %v1581_v18 }
 0x2b1   :  { %2424 = vmatmul.mubr.bf16.vlgmr.msra.gmra.mxu1 %v4155_v27  ;;  %2465 = vmatmul.mubr.bf16.vlgmr.msra.gmra.mxu0 %v4134_v47  ;;  %v3778_v47 = vld [vmem:[#allocation7 + $0x22c] ss:$16 sps:$4 sm:$0xff]  }
 0x2b2   :  { %2474 = vmatpush1.bf16.msra.mxu1 %v3758_v59  ;;  %2505 = vmatprep.mubr.bf16.mxu1 %v1581_v18  ;;  %v3832_v18 = vld [vmem:[#allocation9 + $0xd0] sm:$0xff]  }
 0x2b3   :  { %2475 = vmatprep.subr.bf16.mxu1 %v3763_v19  ;;  %3320 = vmatpush3.bf16.msra.mxu0 %v3807_v46  ;;  %v3833_v59 = vld [vmem:[#allocation9 + $0x90] sm:$0xff]   ;;  %v3835_v19 = vld [vmem:[#allocation9 + $0x88] sm:$0xff]  }
 0x2b4   :  { %3321 = vmatprep.subr.bf16.mxu0 %v3808_v48 }
 0x2b6   :  { %2476 = vmatpush1.bf16.msra.mxu1 %v3761_v20  ;;  %v3836_v20 = vld [vmem:[#allocation9 + $0xc0] sm:$0xff]  }
 0x2b7   :  { %2477 = vmatprep.subr.bf16.mxu1 %v3766_v21  ;;  %3322 = vmatpush3.bf16.msra.mxu0 %v3809_v49  ;;  %v3837_v21 = vld [vmem:[#allocation9 + $0x80] sm:$0xff]  }
 0x2b8   :  { %3323 = vmatprep.subr.bf16.mxu0 %v3810_v56 }
 0x2ba   :  { %2478 = vmatpush1.bf16.msra.mxu1 %v3764_v22 }
 0x2bb   :  { %2479 = vmatprep.subr.bf16.mxu1 %v3769_v7  ;;  %3324 = vmatpush3.bf16.msra.mxu0 %v3811_v52 }
 0x2bc   :  { %3325 = vmatprep.subr.bf16.mxu0 %v3812_v53 }
 0x2be   :  { %2480 = vmatpush1.bf16.msra.mxu1 %v3767_v23 }
 0x2bf   :  { %2481 = vmatprep.subr.bf16.mxu1 %v3772_v8  ;;  %3326 = vmatpush3.bf16.msra.mxu0 %v3813_v55 }
 0x2c0   :  { %3327 = vmatprep.subr.bf16.mxu0 %v3814_v57 }
 0x2c2   :  { %2482 = vmatpush1.bf16.msra.mxu1 %v3770_v24 }
 0x2c3   :  { %2483 = vmatprep.subr.bf16.mxu1 %v3775_v25  ;;  %3328 = vmatpush3.bf16.msra.mxu0 %v3815_v58 }
 0x2c4   :  { %3329 = vmatprep.subr.bf16.mxu0 %v3816_v60 }
 0x2c6   :  { %2484 = vmatpush1.bf16.msra.mxu1 %v3773_v28 }
 0x2c7   :  { %2485 = vmatprep.subr.bf16.mxu1 %v3778_v47  ;;  %3330 = vmatpush3.bf16.msra.mxu0 %v3817_v61 }
 0x2c8   :  { %3331 = vmatprep.subr.bf16.mxu0 %v3818_v62 }
 0x2ca   :  { %2486 = vmatpush1.bf16.msra.mxu1 %v3776_v13 }
 0x2cb   :  { %2487 = vmatprep.subr.bf16.mxu1 %v3781_v29  ;;  %3332 = vmatpush3.bf16.msra.mxu0 %v3819_v63 }
 0x2cc   :  { %3333 = vmatprep.subr.bf16.mxu0 %v3820_v0 }
 0x2ce   :  { %2488 = vmatpush1.bf16.msra.mxu1 %v3779_v31 }
 0x2cf   :  { %2489 = vmatprep.subr.bf16.mxu1 %v3784_v32  ;;  %3334 = vmatpush3.bf16.msra.mxu0 %v3821_v1 }
 0x2d2   :  { %2490 = vmatpush2.bf16.msra.mxu1 %v3782_v33 }
 0x2d3   :  { %2491 = vmatprep.subr.bf16.mxu1 %v3787_v34 }
 0x2d6   :  { %2492 = vmatpush2.bf16.msra.mxu1 %v3785_v35 }
 0x2d7   :  { %2493 = vmatprep.subr.bf16.mxu1 %v3790_v36 }
 0x2da   :  { %2494 = vmatpush2.bf16.msra.mxu1 %v3788_v37 }
 0x2db   :  { %2495 = vmatprep.subr.bf16.mxu1 %v3793_v38 }
 0x2de   :  { %2496 = vmatpush2.bf16.msra.mxu1 %v3791_v39 }
 0x2df   :  { %2497 = vmatprep.subr.bf16.mxu1 %v3796_v40 }
 0x2e2   :  { %2498 = vmatpush2.bf16.msra.mxu1 %v3794_v41 }
 0x2e3   :  { %2499 = vmatprep.subr.bf16.mxu1 %v3799_v42 }
 0x2e6   :  { %2500 = vmatpush2.bf16.msra.mxu1 %v3797_v30 }
 0x2e7   :  { %2501 = vmatprep.subr.bf16.mxu1 %v3802_v14 }
 0x2ea   :  { %2502 = vmatpush2.bf16.msra.mxu1 %v3800_v43 }
 0x2eb   :  { %2503 = vmatprep.subr.bf16.mxu1 %v3805_v51 }
 0x2ee   :  { %2504 = vmatpush2.bf16.msra.mxu1 %v3803_v44 }
 0x2ef   :  { %3341 = vmatprep.subr.bf16.mxu1 %v3822_v6  ;;  %v3862_v6 = vld [vmem:[#allocation10] sm:$0x3f] }
 0x2f1   :  { %2506 = vmatmul.mubr.bf16.vlgmr.msra.gmra.mxu1 %v4155_v27  ;;  %v3834_v27 = vld [vmem:[#allocation9 + $0xc8] sm:$0xff]  }
 0x2f2   :  { %3342 = vmatpush3.bf16.msra.mxu1 %v3823_v9 }
 0x2f3   :  { %3343 = vmatprep.subr.bf16.mxu1 %v3824_v10 }
 0x2f6   :  { %3344 = vmatpush3.bf16.msra.mxu1 %v3825_v11 }
 0x2f7   :  { %3345 = vmatprep.subr.bf16.mxu1 %v3826_v12 }
 0x2fa   :  { %3346 = vmatpush3.bf16.msra.mxu1 %v3827_v54  ;;  %v3863_v54 = vld [vmem:[#allocation10 + $0x8] sm:$0x3f] }
 0x2fb   :  { %3347 = vmatprep.subr.bf16.mxu1 %v3828_v15 }
 0x2fe   :  { %3348 = vmatpush3.bf16.msra.mxu1 %v3829_v16 }
 0x2ff   :  { %3349 = vmatprep.subr.bf16.mxu1 %v3830_v17 }
 0x302   :  { %3350 = vmatpush3.bf16.msra.mxu1 %v3831_v26 }
 0x303   :  { %3351 = vmatprep.subr.bf16.mxu1 %v3832_v18 }
 0x306   :  { %3352 = vmatpush3.bf16.msra.mxu1 %v3833_v59 }
 0x307   :  { %3353 = vmatprep.subr.bf16.mxu1 %v3834_v27 }
 0x30a   :  { %3354 = vmatpush3.bf16.msra.mxu1 %v3835_v19 }
 0x30b   :  { %3355 = vmatprep.subr.bf16.mxu1 %v3836_v20 }
 0x30e   :  { %3356 = vmatpush3.bf16.msra.mxu1 %v3837_v21 }
 0x331   :  { %v2384_v2 = vpop.f32.mrf.mxu0 }
 0x333   :  { %v2386_v3 = vpop.f32.mrf.mxu0 }
 0x335   :  { %v2388_v4 = vpop.f32.mrf.mxu0 }
 0x336   :  { %v4168_v4 = vsub.s32 5, %v4088_v50 }
 0x337   :  { %v2389_v5 = vpop.f32.mrf.mxu0 }
 0x338   :  { %v2613_v12 = vrot.slane %v3862_v6, %v4168_v4  ;;  %v2617_v26 = vrot.slane %v3863_v54, %v4168_v4 }
 0x371   :  { %v2425_v22 = vpop.f32.mrf.mxu1  ;;  %v4160_v7 = vpop.f32.mrf.mxu0 }
 0x372   :  { %v2426_v23 = vadd.f32 %v2425_v22, %v2384_v2 }
 0x373   :  { %v2427_v8 = vpop.f32.mrf.mxu1  ;;  %v4162_v24 = vpop.f32.mrf.mxu0 }
 0x374   :  { %v2514_v25 = vrot.slane %v2426_v23, 4  ;;  %v2428_v28 = vadd.f32 %v2427_v8, %v2386_v3  ;;  %v4165_v3 = vsub.s32 4, %v4088_v50 }
 0x375   :  { %v2429_v47 = vpop.f32.mrf.mxu1  ;;  %v2470_v13 = vpop.f32.mrf.mxu0 }
 0x376   :  { %v2515_v29 = vadd.f32 %v2514_v25, %v2426_v23  ;;  %v2520_v31 = vrot.slane %v2428_v28, 4 }
 0x377   :  { %v2430_v32 = vpop.f32.mrf.mxu1  ;;  %v2471_v33 = vpop.f32.mrf.mxu0 }
 0x378   :  { %v2516_v34 = vrot.slane %v2515_v29, 2  ;;  %v2521_v35 = vadd.f32 %v2520_v31, %v2428_v28 }
 0x37a   :  { %v2517_v36 = vadd.f32 %v2516_v34, %v2515_v29  ;;  %v2522_v37 = vrot.slane %v2521_v35, 2 }
 0x37c   :  { %v2518_v38 = vrot.slane %v2517_v36, 1  ;;  %v2523_v39 = vadd.f32 %v2522_v37, %v2521_v35 }
 0x37e   :  { %v2519_v40 = vadd.f32 %v2518_v38, %v2517_v36  ;;  %v2524_v41 = vrot.slane %v2523_v39, 1 }
 0x380   :  { %v2538_v42 = vmul.f32 0.125, %v2519_v40  ;;  %v2525_v30 = vadd.f32 %v2524_v41, %v2523_v39 }
 0x382   :  { %v2542_v14 = vsub.f32 %v2426_v23, %v2538_v42  ;;  %v2539_v43 = vmul.f32 0.125, %v2525_v30 }
 0x384   :  { %v2546_v51 = vmul.f32 %v2542_v14, %v2542_v14  ;;  %v2543_v44 = vsub.f32 %v2428_v28, %v2539_v43 }
 0x386   :  { %v2550_v45 = vrot.slane %v2546_v51, 4  ;;  %v2547_v46 = vmul.f32 %v2543_v44, %v2543_v44 }
 0x388   :  { %v2551_v48 = vadd.f32 %v2550_v45, %v2546_v51  ;;  %v2556_v49 = vrot.slane %v2547_v46, 4 }
 0x38a   :  { %v2552_v56 = vrot.slane %v2551_v48, 2  ;;  %v2557_v52 = vadd.f32 %v2556_v49, %v2547_v46 }
 0x38c   :  { %v2553_v53 = vadd.f32 %v2552_v56, %v2551_v48  ;;  %v2558_v55 = vrot.slane %v2557_v52, 2 }
 0x38e   :  { %v2554_v57 = vrot.slane %v2553_v53, 1  ;;  %v2559_v58 = vadd.f32 %v2558_v55, %v2557_v52 }
 0x390   :  { %v2555_v60 = vadd.f32 %v2554_v57, %v2553_v53  ;;  %v2560_v61 = vrot.slane %v2559_v58, 1 }
 0x392   :  { %v2574_v62 = vmul.f32 0.125, %v2555_v60  ;;  %v2561_v63 = vadd.f32 %v2560_v61, %v2559_v58 }
 0x394   :  { %v2578_v0 = vadd.f32 1e-05, %v2574_v62  ;;  %v2575_v1 = vmul.f32 0.125, %v2561_v63 }
 0x396   :  { %3854 = vrsqrt.f32 %v2578_v0  ;;  %v2579_v2 = vadd.f32 1e-05, %v2575_v1 }
 0x398   :  { %3856 = vrsqrt.f32 %v2579_v2  ;;  %v3864_v2 = vld [vmem:[#allocation10 + $0x10] sm:$0x3f] }
 0x3a3   :  { %v3855_v5 = vpop.eup %3854 }
 0x3a4   :  { %v2586_v9 = vmul.f32 %v3862_v6, %v3855_v5 }
 0x3a5   :  { %v3857_v10 = vpop.eup %3856 }
 0x3a6   :  { %v2593_v11 = vrot.slane %v2586_v9, %v4165_v3  ;;  %v2587_v15 = vmul.f32 %v3863_v54, %v3857_v10  ;;  %v2621_v10 = vrot.slane %v3864_v2, %v4168_v4 }
 0x3a8   :  { %v2606_v16 = vmul.f32 %v2593_v11, %v2542_v14  ;;  %v2597_v17 = vrot.slane %v2587_v15, %v4165_v3  ;;  %v3865_v11 = vld [vmem:[#allocation10 + $0x18] sm:$0x3f] }
 0x3aa   :  { %v2626_v18 = vadd.f32 %v2613_v12, %v2606_v16  ;;  %v2607_v59 = vmul.f32 %v2597_v17, %v2543_v44  ;;  %v2625_v16 = vrot.slane %v3865_v11, %v4168_v4  ;;  %v3286_v4 = vld [vmem:[%s4192_s6] ss:$0 sm:$0xff] }
 0x3ac   :  { %v2627_v27 = vadd.f32 %v2617_v26, %v2607_v59  ;;  %vm2630_vm8 = vcmp.gt.f32.partialorder %v2626_v18, 0.0  ;;  %v2634_v50 = vmul.f32 0.01, %v2626_v18 }
 0x3ae   :  { %vm2631_vm9 = vcmp.gt.f32.partialorder %v2627_v27, 0.0  ;;  %v2635_v19 = vmul.f32 0.01, %v2627_v27  ;;  %v2638_v20 = vsel %vm2630_vm8, %v2626_v18, %v2634_v50 }
 0x3af   :  { %v2642_v25 = vpack.c.bf16 %v2638_v20, %v2638_v20 }
 0x3b0   :  { %v2639_v21 = vsel %vm2631_vm9, %v2627_v27, %v2635_v19 }
 0x3b1   :  { %v2507_v22 = vpop.f32.mrf.mxu1  ;;  %v2643_v23 = vpack.c.bf16 %v2639_v21, %v2639_v21 }
 0x3b2   :  { %v2508_v8 = vadd.f32 %v2507_v22, %v4160_v7 }
 0x3b3   :  { %v2509_v28 = vpop.f32.mrf.mxu1  ;;  %2941 = vmatprep.mubr.bf16.mxu0 %v2643_v23 }
 0x3b4   :  { %v2526_v47 = vrot.slane %v2508_v8, 4  ;;  %v2510_v13 = vadd.f32 %v2509_v28, %v4162_v24  ;;  %2942 = vmatmul.mubr.bf16.vlgmr.msra.gmra.mxu0 %v2642_v25 }
 0x3b5   :  { %v2511_v29 = vpop.f32.mrf.mxu1 }
 0x3b6   :  { %v2527_v31 = vadd.f32 %v2526_v47, %v2508_v8  ;;  %v2532_v32 = vrot.slane %v2510_v13, 4 }
 0x3b7   :  { %v2512_v33 = vpop.f32.mrf.mxu1 }
 0x3b8   :  { %v2528_v34 = vrot.slane %v2527_v31, 2  ;;  %v2533_v35 = vadd.f32 %v2532_v32, %v2510_v13 }
 0x3ba   :  { %v2529_v36 = vadd.f32 %v2528_v34, %v2527_v31  ;;  %v2534_v37 = vrot.slane %v2533_v35, 2 }
 0x3bc   :  { %v2530_v38 = vrot.slane %v2529_v36, 1  ;;  %v2535_v39 = vadd.f32 %v2534_v37, %v2533_v35 }
 0x3be   :  { %v2531_v40 = vadd.f32 %v2530_v38, %v2529_v36  ;;  %v2536_v41 = vrot.slane %v2535_v39, 1 }
 0x3c0   :  { %v2540_v7 = vmul.f32 0.125, %v2531_v40  ;;  %v2537_v42 = vadd.f32 %v2536_v41, %v2535_v39 }
 0x3c2   :  { %v2544_v30 = vsub.f32 %v2508_v8, %v2540_v7  ;;  %v2541_v14 = vmul.f32 0.125, %v2537_v42 }
 0x3c4   :  { %v2548_v43 = vmul.f32 %v2544_v30, %v2544_v30  ;;  %v2545_v51 = vsub.f32 %v2510_v13, %v2541_v14 }
 0x3c6   :  { %v2562_v24 = vrot.slane %v2548_v43, 4  ;;  %v2549_v44 = vmul.f32 %v2545_v51, %v2545_v51 }
 0x3c8   :  { %v2563_v45 = vadd.f32 %v2562_v24, %v2548_v43  ;;  %v2568_v46 = vrot.slane %v2549_v44, 4 }
 0x3ca   :  { %v2564_v48 = vrot.slane %v2563_v45, 2  ;;  %v2569_v49 = vadd.f32 %v2568_v46, %v2549_v44 }
 0x3cc   :  { %v2565_v56 = vadd.f32 %v2564_v48, %v2563_v45  ;;  %v2570_v52 = vrot.slane %v2569_v49, 2 }
 0x3ce   :  { %v2566_v53 = vrot.slane %v2565_v56, 1  ;;  %v2571_v55 = vadd.f32 %v2570_v52, %v2569_v49 }
 0x3d0   :  { %v2567_v57 = vadd.f32 %v2566_v53, %v2565_v56  ;;  %v2572_v58 = vrot.slane %v2571_v55, 1 }
 0x3d2   :  { %v2576_v60 = vmul.f32 0.125, %v2567_v57  ;;  %v2573_v61 = vadd.f32 %v2572_v58, %v2571_v55 }
 0x3d4   :  { %v2580_v62 = vadd.f32 1e-05, %v2576_v60  ;;  %v2577_v63 = vmul.f32 0.125, %v2573_v61 }
 0x3d6   :  { %3858 = vrsqrt.f32 %v2580_v62  ;;  %v2581_v0 = vadd.f32 1e-05, %v2577_v63 }
 0x3d8   :  { %3860 = vrsqrt.f32 %v2581_v0 }
 0x3e3   :  { %v3859_v1 = vpop.eup %3858 }
 0x3e4   :  { %v2588_v5 = vmul.f32 %v3864_v2, %v3859_v1 }
 0x3e5   :  { %v3861_v6 = vpop.eup %3860 }
 0x3e6   :  { %v2601_v9 = vrot.slane %v2588_v5, %v4165_v3  ;;  %v2589_v12 = vmul.f32 %v3865_v11, %v3861_v6 }
 0x3e8   :  { %v2608_v54 = vmul.f32 %v2601_v9, %v2544_v30  ;;  %v2605_v15 = vrot.slane %v2589_v12, %v4165_v3 }
 0x3ea   :  { %v2628_v17 = vadd.f32 %v2621_v10, %v2608_v54  ;;  %v2609_v26 = vmul.f32 %v2605_v15, %v2545_v51 }
 0x3ec   :  { %v2629_v18 = vadd.f32 %v2625_v16, %v2609_v26  ;;  %vm2632_vm10 = vcmp.gt.f32.partialorder %v2628_v17, 0.0  ;;  %v2636_v59 = vmul.f32 0.01, %v2628_v17 }
 0x3ee   :  { %vm2633_vm11 = vcmp.gt.f32.partialorder %v2629_v18, 0.0  ;;  %v2637_v27 = vmul.f32 0.01, %v2629_v18  ;;  %v2640_v50 = vsel %vm2632_vm10, %v2628_v17, %v2636_v59 }
 0x3ef   :  { %v2644_v21 = vpack.c.bf16 %v2640_v50, %v2640_v50 }
 0x3f0   :  { %v2641_v19 = vsel %vm2633_vm11, %v2629_v18, %v2637_v27 }
 0x3f1   :  { %v2645_v20 = vpack.c.bf16 %v2641_v19, %v2641_v19 }
 0x3f3   :  { %2981 = vmatprep.mubr.bf16.mxu1 %v2645_v20 }
 0x3f4   :  { %2982 = vmatmul.mubr.bf16.vlgmr.msra.gmra.mxu1 %v2644_v21 }
 0x474   :  { %v3335_v22 = vpop.f32.mrf.mxu0 }
 0x476   :  { %v3336_v23 = vpop.f32.mrf.mxu0 }
 0x477   :  { %v3337_v3 = vadd.f32 %v3336_v23, %v3335_v22 }
 0x478   :  { %v3338_v8 = vpop.f32.mrf.mxu0 }
 0x479   :  { %v2944_v13 = vadd.f32 %v3337_v3, %v3286_v4 }
 0x47a   :  { %v3339_v25 = vpop.f32.mrf.mxu0 }
 0x4b4   :  { %v3357_v28 = vpop.f32.mrf.mxu1 }
 0x4b6   :  { %v3358_v47 = vpop.f32.mrf.mxu1 }
 0x4b7   :  { %v3359_v29 = vadd.f32 %v3358_v47, %v3357_v28 }
 0x4b8   :  { %v3360_v31 = vpop.f32.mrf.mxu1 }
 0x4b9   :  { %v2984_v32 = vadd.f32 %v3359_v29, %v2944_v13 }
 0x4ba   :  { %v3361_v33 = vpop.f32.mrf.mxu1 }
 0x4bb   :  { %2989 = vst [vmem:[%s4193_s7] sm:$0xff] %v2984_v32 }
 0x4bc   :  { %2994 = vsyncpa [#allocation3], 1 }
 0x4bd   :  { %2995 = vsyncpa [#allocation5], 1 }
 0x4be   :  { %2996 = vsyncpa [#allocation8], 1 }
 0x4bf   :  { %2997 = vsyncpa [#allocation11], 1 }

</bundles_post_ra>
